<compile_context>
chip_gen: v6e
topology: v6e:2x2x1
jax: 0.10.0
libtpu: 0.0.40
codegen_flags: <defaults>
</compile_context>

<pallas_src>
import numpy as np
import jax
import jax.numpy as jnp
from jax import lax
from jax.experimental import pallas as pl
from jax.experimental.pallas import tpu as pltpu

D_IN = 8        # module's d_in
N_PTS = 256     # points per room (lane aligned)
W_ROWS = 64     # packed weight slab rows (59 used, padded to 64)
PP_W = 24       # per-plane param lane width
XF_ROWS = 2 * D_IN + 8   # 16 feature rows + [x,y,z,1,0,0,0,0]


def pack_weights(weights, C=D_IN):
    """Pack the 11 conv/bias arrays into one (W_ROWS, 128) f32 slab.

    Tail weights (fc3/fc4/att mlp) are stored TRANSPOSED so the per-plane
    batched tail matmuls run as (K,C)@(C,C) with no in-kernel transpose.
    """
    (w1, b1, w2, b2, w3, b3, w4, b4, watt, wmlp, bmlp) = [
        np.asarray(w, np.float32) for w in weights]
    C2 = 2 * C
    slab = np.zeros((W_ROWS, 128), np.float32)
    slab[0:C2, 0:C2] = w1;        slab[0:C2, C2:C2 + 1] = b1
    r = C2
    slab[r:r + C, 0:C2] = w2;     slab[r:r + C, C2:C2 + 1] = b2;  r += C
    slab[r:r + C, 0:C] = watt;                                    r += C
    slab[r:r + C, 0:C] = w3.T;                                    r += C
    slab[r:r + C, 0:4] = w4.T;                                    r += C   # cols 4..7 zero
    slab[r:r + C, 0:C] = wmlp.T;                                  r += C
    slab[r, 0:C] = b3[:, 0];                                      r += 1
    slab[r, 0:4] = b4[:, 0];                                      r += 1
    slab[r, 0:C] = bmlp[:, 0]
    return jnp.asarray(slab)


def _room_kernel(xf_ref,        # VMEM (1, XF_ROWS, N): 16 feat rows + [x,y,z,1,0..]
                 pp_ref,        # VMEM (1, K, PP_W):   per-plane params (padded planes → empty)
                 w_ref,         # VMEM (W_ROWS, 128):  packed weights (resident)
                 pt_ref,        # VMEM out (1, 4K, N): [mask | signed | on-mask | off-mask]
                 small_ref):    # VMEM out (1, 3K, C): [fc4 out | on pooled | off pooled]
    C = D_IN
    C2 = 2 * C

    slab = xf_ref[0]                      # (XF_ROWS, N)
    pp = pp_ref[0]                        # (K, PP_W)
    K = pp.shape[0]

    feat = slab[0:C2, :]                  # (2C, N)
    xyzone8 = slab[C2:C2 + 8, :]          # (8, N): x, y, z, 1, 0, 0, 0, 0
    x = slab[C2:C2 + 1, :]                # (1, N)
    y = slab[C2 + 1:C2 + 2, :]
    z = slab[C2 + 2:C2 + 3, :]

    # ---- packed weight slab (static slices) ----
    w1 = w_ref[0:C2, 0:C2];          b1 = w_ref[0:C2, C2:C2 + 1]
    r = C2
    w2 = w_ref[r:r + C, 0:C2];       b2 = w_ref[r:r + C, C2:C2 + 1]; r += C
    watt = w_ref[r:r + C, 0:C];      r += C
    w3t = w_ref[r:r + C, 0:C];       r += C
    w4t = w_ref[r:r + C, 0:C];       r += C          # (C, 8), cols 4..7 zero
    wmlpt = w_ref[r:r + C, 0:C];     r += C
    b3r = w_ref[r:r + 1, 0:C];       r += 1          # (1, C)
    b4r = w_ref[r:r + 1, 0:C];       r += 1          # (1, 8), lanes 4..7 zero
    bmlpr = w_ref[r:r + 1, 0:C]

    # ---- room-level features (computed ONCE per room) ----
    h1 = jnp.maximum(jnp.dot(w1, feat, preferred_element_type=jnp.float32) + b1, 0.0)   # (2C,N)
    h2 = jnp.maximum(jnp.dot(w2, h1, preferred_element_type=jnp.float32) + b2, 0.0)     # (C, N)
    att_base = jnp.dot(watt, h2, preferred_element_type=jnp.float32)                    # (C, N)

    # ---- per-plane masks, vectorized over all K planes ----
    # base[k, n] = n_k · xyz_n + D_k   (param lanes 4..7 and xyzone rows 4..7 are zero)
    base = jnp.dot(pp[:, 0:8], xyzone8, preferred_element_type=jnp.float32)             # (K, N)

    mn0 = pp[:, 8:9];  mn1 = pp[:, 9:10];  mn2 = pp[:, 10:11]
    mx0 = pp[:, 11:12]; mx1 = pp[:, 12:13]; mx2 = pp[:, 13:14]
    s0 = pp[:, 14:15]; s1 = pp[:, 15:16]; s2 = pp[:, 16:17]

    rm0 = jnp.logical_or(s0 < 0.5, jnp.logical_and(x >= mn0, x < mx0))                  # (K, N)
    rm1 = jnp.logical_or(s1 < 0.5, jnp.logical_and(y >= mn1, y < mx1))
    rm2 = jnp.logical_or(s2 < 0.5, jnp.logical_and(z >= mn2, z < mx2))
    range_mask = jnp.logical_and(jnp.logical_and(rm0, rm1), rm2)

    mask = jnp.logical_and(jnp.abs(base) < 0.1, range_mask)                             # (K, N)
    mask_f = mask.astype(jnp.float32)

    neg = jnp.float32(-1e30)

    # ---- masked max-pool over kept points, batched across planes ----
    any_kept = jnp.max(mask_f, axis=1, keepdims=True)                                   # (K, 1)
    masked_h2 = jnp.where(mask[:, None, :], h2[None, :, :], neg)                        # (K, C, N)
    pooled = jnp.max(masked_h2, axis=-1)                                                # (K, C)
    pooled = jnp.where(any_kept > 0, pooled, 0.0)       # gate empty planes (host skips them)

    # ---- tail 1x1 convs, batched: planes on sublanes ----
    h3 = jnp.maximum(jnp.dot(pooled, w3t, preferred_element_type=jnp.float32) + b3r, 0.0)   # (K, C)
    p4 = jnp.maximum(jnp.dot(h3, w4t, preferred_element_type=jnp.float32) + b4r, 0.0)       # (K, 8)

    # signed residual w.r.t. refined plane (p4 + [n, D]):
    #   signed = (p4[:4] + [n,D]) · [xyz;1] = p4 · [x;y;z;1;0..] + base
    delta = jnp.dot(p4, xyzone8, preferred_element_type=jnp.float32)                    # (K, N)
    signed = delta + base

    m_on = jnp.logical_and(mask, signed > 0)
    m_off = jnp.logical_and(mask, signed <= 0)

    def att_pool(msk):
        # Att_pooling: fc (no bias) -> softmax over kept points -> weighted sum -> mlp+ReLU
        mskf = msk.astype(jnp.float32)
        att = jnp.where(msk[:, None, :], att_base[None, :, :], neg)                     # (K, C, N)
        mx = jnp.max(att, axis=-1, keepdims=True)                                       # (K, C, 1)
        e = jnp.exp(att - mx) * mskf[:, None, :]
        denom = jnp.sum(e, axis=-1, keepdims=True)
        inv = pl.reciprocal(jnp.maximum(denom, 1e-30), approx=True)
        scores = e * inv
        agg = jnp.sum(h2[None, :, :] * scores, axis=-1)                                 # (K, C)
        return jnp.maximum(
            jnp.dot(agg, wmlpt, preferred_element_type=jnp.float32) + bmlpr, 0.0)       # (K, C)

    on_out = att_pool(m_on)
    off_out = att_pool(m_off)

    # ---- outputs: direct sublane-aligned slice stores ----
    pt_ref[0, 0:K, :] = mask_f
    pt_ref[0, K:2 * K, :] = signed
    pt_ref[0, 2 * K:3 * K, :] = m_on.astype(jnp.float32)
    pt_ref[0, 3 * K:4 * K, :] = m_off.astype(jnp.float32)

    small_ref[0, 0:K, :] = p4                    # cols 0..3 = plane delta (fc4 output)
    small_ref[0, K:2 * K, :] = on_out
    small_ref[0, 2 * K:3 * K, :] = off_out


def plane_refine_pallas(xyzfeat, plane_params, wslab):
    """One batched call: grid over rooms, all planes of a room per grid step."""
    B, XF, N = xyzfeat.shape
    _, MAXP, _ = plane_params.shape
    C = D_IN

    grid_spec = pltpu.PrefetchScalarGridSpec(
        num_scalar_prefetch=0,
        grid=(B,),
        in_specs=[
            pl.BlockSpec((1, XF, N), lambda b: (b, 0, 0)),           # room feature+xyz slab
            pl.BlockSpec((1, MAXP, PP_W), lambda b: (b, 0, 0)),      # room's plane params
            pl.BlockSpec((W_ROWS, 128), lambda b: (0, 0)),           # weight slab (resident)
        ],
        out_specs=[
            pl.BlockSpec((1, 4 * MAXP, N), lambda b: (b, 0, 0)),
            pl.BlockSpec((1, 3 * MAXP, C), lambda b: (b, 0, 0)),
        ],
    )
    return pl.pallas_call(
        _room_kernel,
        grid_spec=grid_spec,
        out_shape=[
            jax.ShapeDtypeStruct((B, 4 * MAXP, N), jnp.float32),     # mask/signed/on/off per plane
            jax.ShapeDtypeStruct((B, 3 * MAXP, C), jnp.float32),     # fc4 out, on-pooled, off-pooled
        ],
        compiler_params=pltpu.CompilerParams(
            dimension_semantics=("parallel",)),
    )(xyzfeat, plane_params, wslab)


# ---------------- parameter construction (deterministic, synthetic) ----------------

def _fold_bn(w, gamma, beta, mean, var, eps=1e-5):
    # eval-mode BatchNorm folded into the preceding 1x1 conv
    s = gamma / jnp.sqrt(var + eps)
    return (w * s[:, None]).astype(jnp.float32), ((beta - s * mean)[:, None]).astype(jnp.float32)


def init_params(key, d_in):
    C = d_in
    ks = list(jax.random.split(key, 20))

    def nrm(k, shape, scale=0.05):
        return (scale * jax.random.normal(k, shape)).astype(jnp.float32)

    # TODO(synk): bn=True layers use eval-mode (running-stat) BatchNorm folded
    # into the conv; training-mode batch statistics are not reproduced.
    w1, b1 = _fold_bn(nrm(ks[0], (2 * C, 2 * C)),
                      1.0 + 0.1 * jax.random.normal(ks[1], (2 * C,)),
                      0.05 * jax.random.normal(ks[2], (2 * C,)),
                      0.01 * jax.random.normal(ks[3], (2 * C,)),
                      jnp.abs(1.0 + 0.1 * jax.random.normal(ks[4], (2 * C,))))
    w2, b2 = _fold_bn(nrm(ks[5], (C, 2 * C)),
                      1.0 + 0.1 * jax.random.normal(ks[6], (C,)),
                      0.05 * jax.random.normal(ks[7], (C,)),
                      0.01 * jax.random.normal(ks[8], (C,)),
                      jnp.abs(1.0 + 0.1 * jax.random.normal(ks[9], (C,))))
    w3 = nrm(ks[10], (C, C)); b3 = nrm(ks[11], (C, 1))
    w4 = nrm(ks[12], (4, C)); b4 = nrm(ks[13], (4, 1))
    watt = nrm(ks[14], (C, C))                               # Att_pooling.fc (bias=False)
    wmlp = nrm(ks[15], (C, C)); bmlp = nrm(ks[16], (C, 1))   # Att_pooling.mlp (bn=False)
    return (w1, b1, w2, b2, w3, b3, w4, b4, watt, wmlp, bmlp)


# ---------------- glue reproducing get_nearby_plane_points / forward ----------------

def plane_refine_block_4_forward(weight_slab, feature, feature_geo, xyz, cloud_names,
                                 centers, planes_per_room):
    B = len(cloud_names)
    N = feature.shape[-1]

    room_list = [{
        'label_list': [], 'on_plane_idx_list': [], 'off_plane_idx_list': [],
        'on_plane_feature_list': [], 'off_plane_feature_list': [],
        'plane_result_list': [], 'mask': [],
    } for _ in range(B)]

    max_planes = max((len(p) for p in planes_per_room), default=0)
    if max_planes == 0:
        return room_list
    MAXP = max(8, ((max_planes + 7) // 8) * 8)   # sublane-aligned plane padding per room

    # room feature+xyz slab (B, 24, N): 16 feat rows + [x, y, z, 1, 0, 0, 0, 0]
    xyz_t = jnp.transpose(xyz + centers[:, None, :], (0, 2, 1)).astype(jnp.float32)      # (B,3,N)
    feat16 = jnp.concatenate([feature, feature_geo], axis=1).astype(jnp.float32)         # (B,16,N)
    xyzfeat = jnp.concatenate(
        [feat16, xyz_t, jnp.ones((B, 1, N), jnp.float32), jnp.zeros((B, 4, N), jnp.float32)],
        axis=1)                                                                           # (B,24,N)

    # per-plane scalar params, padded per room; padded slots get D=1 → empty mask
    # TODO(synk): pandas CSV plane table (config.plane_path) replaced by an
    # in-script synthetic plane list with the same fields.
    params = np.zeros((B, MAXP, PP_W), np.float32)
    params[:, :, 3] = 1.0
    plane_meta = []
    for i in range(B):
        for j, plane in enumerate(planes_per_room[i]):
            center = np.asarray(plane['center'], np.float32)
            normal = np.asarray(plane['normal'], np.float32)
            xyz_min = np.asarray(plane['xyz_min'], np.float32)
            xyz_max = np.asarray(plane['xyz_max'], np.float32)
            arange = np.nonzero(xyz_max != 0)[0]
            sel = np.zeros(3, np.float32)
            sel[arange[0]] = 1.0
            sel[arange[1]] = 1.0
            Dp = float(-(center @ normal))
            params[i, j, 0:3] = normal
            params[i, j, 3] = Dp
            params[i, j, 8:11] = xyz_min
            params[i, j, 11:14] = xyz_max
            params[i, j, 14:17] = sel
            plane_meta.append((i, j, plane, normal, Dp, xyz_min, xyz_max))

    pt_out, small_out = plane_refine_pallas(xyzfeat, jnp.asarray(params), weight_slab)
    pt_out, small_out = jax.block_until_ready((pt_out, small_out))   # single sync for all rooms
    pt_out = np.asarray(pt_out)
    small_out = np.asarray(small_out)

    idx = np.arange(N)
    for (i, j, plane, normal, Dp, xyz_min, xyz_max) in plane_meta:
        mask = pt_out[i, j] > 0
        if int(mask.sum()) <= 1:
            continue
        rr = room_list[i]
        rr['label_list'].append(plane['label'])
        rr['mask'].append(mask)
        rr['plane_result_list'].append(pt_out[i, MAXP + j][mask])

        new_plane = small_out[i, j, 0:4] + np.concatenate([normal, [Dp]]).astype(np.float32)
        ori_plane_feature = np.concatenate(
            [new_plane, xyz_min, xyz_max]).reshape(1, 10, 1, 1).astype(np.float32)

        mon = pt_out[i, 2 * MAXP + j] > 0
        moff = pt_out[i, 3 * MAXP + j] > 0
        if int(mon.sum()) != 0:
            rr['on_plane_idx_list'].append(idx[mon])
            on_feat = np.concatenate(
                [small_out[i, MAXP + j, :].reshape(1, -1, 1, 1), ori_plane_feature], axis=1)
            rr['on_plane_feature_list'].append(on_feat)
        else:
            rr['on_plane_idx_list'].append([])
            rr['on_plane_feature_list'].append([])
        if int(moff.sum()) != 0:
            rr['off_plane_idx_list'].append(idx[moff])
            off_feat = np.concatenate(
                [small_out[i, 2 * MAXP + j, :].reshape(1, -1, 1, 1), ori_plane_feature], axis=1)
            rr['off_plane_feature_list'].append(off_feat)
        else:
            rr['off_plane_idx_list'].append([])
            rr['off_plane_feature_list'].append([])
    return room_list


if __name__ == "__main__":
    key = jax.random.PRNGKey(0)
    kf, kg, kx, kw = jax.random.split(key, 4)

    B = 2
    feature = jax.random.normal(kf, (B, D_IN, N_PTS), jnp.float32)
    feature_geo = jax.random.normal(kg, (B, D_IN, N_PTS), jnp.float32)
    xyz = jax.random.uniform(kx, (B, N_PTS, 3), dtype=jnp.float32)
    centers = jnp.asarray([[0.10, -0.10, 0.05],
                           [-0.05, 0.02, 0.10]], jnp.float32)
    cloud_names = ["room_a", "room_b"]

    weights = init_params(kw, D_IN)
    weight_slab = pack_weights(weights)

    planes_per_room = [
        [dict(center=[0.5, 0.4, 0.55], normal=[0.0, 0.0, 1.0],
              xyz_min=[0.0, 0.0, 0.0], xyz_max=[1.0, 0.9, 0.0], label=1),
         dict(center=[0.6, 0.4, 0.55], normal=[1.0, 0.0, 0.0],
              xyz_min=[0.0, 0.0, 0.05], xyz_max=[0.0, 0.9, 1.05], label=2)],
        [dict(center=[0.45, 0.52, 0.6], normal=[0.0, 1.0, 0.0],
              xyz_min=[0.0, 0.0, 0.1], xyz_max=[0.95, 0.0, 1.1], label=3)],
    ]

    room_list = plane_refine_block_4_forward(
        weight_slab, feature, feature_geo, xyz, cloud_names, centers, planes_per_room)

    # sanity: at least one plane was processed end-to-end
    n_planes = sum(len(r['label_list']) for r in room_list)
    assert n_planes >= 1
    for r in room_list:
        for f in r['on_plane_feature_list']:
            if isinstance(f, np.ndarray):
                assert f.shape == (1, D_IN + 10, 1, 1)
    print("KERNEL_OK")
</pallas_src>

<mosaic_0001>
module attributes {stable_mosaic.version = 11 : i64} {
  func.func @_room_kernel(%arg0: i32, %arg1: memref<1x24x256xf32, #tpu.memory_space<vmem>>, %arg2: memref<1x8x24xf32, #tpu.memory_space<vmem>>, %arg3: memref<64x128xf32, #tpu.memory_space<vmem>>, %arg4: memref<1x32x256xf32, #tpu.memory_space<vmem>>, %arg5: memref<1x24x8xf32, #tpu.memory_space<vmem>>) attributes {dimension_semantics = [#tpu.dimension_semantics<parallel>], iteration_bounds = array<i64: 2>, scalar_prefetch = 0 : i64, scratch_operands = 0 : i64, tpu.core_type = #tpu.core_type<tc>, window_params = [{transform_indices = @transform_0, window_bounds = array<i64: 1, 24, 256>}, {transform_indices = @transform_1, window_bounds = array<i64: 1, 8, 24>}, {pipeline_mode = #tpu.pipeline_mode<synchronous>, transform_indices = @transform_2, window_bounds = array<i64: 64, 128>}, {transform_indices = @transform_3, window_bounds = array<i64: 1, 32, 256>}, {transform_indices = @transform_4, window_bounds = array<i64: 1, 24, 8>}]} {
    %c0 = arith.constant 0 : index
    %c0_0 = arith.constant 0 : index
    %c0_1 = arith.constant 0 : index
    %0 = vector.load %arg1[%c0, %c0_0, %c0_1] : memref<1x24x256xf32, #tpu.memory_space<vmem>>, vector<1x24x256xf32>
    %1 = vector.shape_cast %0 : vector<1x24x256xf32> to vector<24x256xf32>
    %c0_2 = arith.constant 0 : index
    %c0_3 = arith.constant 0 : index
    %c0_4 = arith.constant 0 : index
    %2 = vector.load %arg2[%c0_2, %c0_3, %c0_4] : memref<1x8x24xf32, #tpu.memory_space<vmem>>, vector<1x8x24xf32>
    %3 = vector.shape_cast %2 : vector<1x8x24xf32> to vector<8x24xf32>
    %4 = vector.extract_strided_slice %1 {offsets = [0, 0], sizes = [16, 256], strides = [1, 1]} : vector<24x256xf32> to vector<16x256xf32>
    %5 = vector.extract_strided_slice %1 {offsets = [16, 0], sizes = [8, 256], strides = [1, 1]} : vector<24x256xf32> to vector<8x256xf32>
    %6 = vector.extract_strided_slice %1 {offsets = [16, 0], sizes = [1, 256], strides = [1, 1]} : vector<24x256xf32> to vector<1x256xf32>
    %7 = vector.extract_strided_slice %1 {offsets = [17, 0], sizes = [1, 256], strides = [1, 1]} : vector<24x256xf32> to vector<1x256xf32>
    %8 = vector.extract_strided_slice %1 {offsets = [18, 0], sizes = [1, 256], strides = [1, 1]} : vector<24x256xf32> to vector<1x256xf32>
    %c0_5 = arith.constant 0 : index
    %c0_6 = arith.constant 0 : index
    %9 = vector.load %arg3[%c0_5, %c0_6] : memref<64x128xf32, #tpu.memory_space<vmem>>, vector<16x16xf32>
    %c0_7 = arith.constant 0 : index
    %c16 = arith.constant 16 : index
    %10 = vector.load %arg3[%c0_7, %c16] : memref<64x128xf32, #tpu.memory_space<vmem>>, vector<16x1xf32>
    %c16_8 = arith.constant 16 : index
    %c0_9 = arith.constant 0 : index
    %11 = vector.load %arg3[%c16_8, %c0_9] : memref<64x128xf32, #tpu.memory_space<vmem>>, vector<8x16xf32>
    %c16_10 = arith.constant 16 : index
    %c16_11 = arith.constant 16 : index
    %12 = vector.load %arg3[%c16_10, %c16_11] : memref<64x128xf32, #tpu.memory_space<vmem>>, vector<8x1xf32>
    %c24 = arith.constant 24 : index
    %c0_12 = arith.constant 0 : index
    %13 = vector.load %arg3[%c24, %c0_12] : memref<64x128xf32, #tpu.memory_space<vmem>>, vector<8x8xf32>
    %c32 = arith.constant 32 : index
    %c0_13 = arith.constant 0 : index
    %14 = vector.load %arg3[%c32, %c0_13] : memref<64x128xf32, #tpu.memory_space<vmem>>, vector<8x8xf32>
    %c40 = arith.constant 40 : index
    %c0_14 = arith.constant 0 : index
    %15 = vector.load %arg3[%c40, %c0_14] : memref<64x128xf32, #tpu.memory_space<vmem>>, vector<8x8xf32>
    %c48 = arith.constant 48 : index
    %c0_15 = arith.constant 0 : index
    %16 = vector.load %arg3[%c48, %c0_15] : memref<64x128xf32, #tpu.memory_space<vmem>>, vector<8x8xf32>
    %c56 = arith.constant 56 : index
    %c0_16 = arith.constant 0 : index
    %17 = vector.load %arg3[%c56, %c0_16] : memref<64x128xf32, #tpu.memory_space<vmem>>, vector<1x8xf32>
    %c57 = arith.constant 57 : index
    %c0_17 = arith.constant 0 : index
    %18 = vector.load %arg3[%c57, %c0_17] : memref<64x128xf32, #tpu.memory_space<vmem>>, vector<1x8xf32>
    %c58 = arith.constant 58 : index
    %c0_18 = arith.constant 0 : index
    %19 = vector.load %arg3[%c58, %c0_18] : memref<64x128xf32, #tpu.memory_space<vmem>>, vector<1x8xf32>
    %cst = arith.constant dense<0.000000e+00> : vector<16x256xf32>
    %20 = tpu.matmul %9, %4, %cst {dimension_numbers = #tpu.dot_dimension_numbers<[1], [0], [0], [1], [0, 0, 1, 1], [], []>} : vector<16x16xf32>, vector<16x256xf32>, vector<16x256xf32> -> vector<16x256xf32>
    %21 = vector.broadcast %10 : vector<16x1xf32> to vector<16x256xf32>
    %22 = arith.addf %20, %21 : vector<16x256xf32>
    %cst_19 = arith.constant 0.000000e+00 : f32
    %23 = vector.broadcast %cst_19 : f32 to vector<16x256xf32>
    %24 = arith.maximumf %22, %23 : vector<16x256xf32>
    %cst_20 = arith.constant dense<0.000000e+00> : vector<8x256xf32>
    %25 = tpu.matmul %11, %24, %cst_20 {dimension_numbers = #tpu.dot_dimension_numbers<[1], [0], [0], [1], [0, 0, 1, 1], [], []>} : vector<8x16xf32>, vector<16x256xf32>, vector<8x256xf32> -> vector<8x256xf32>
    %26 = vector.broadcast %12 : vector<8x1xf32> to vector<8x256xf32>
    %27 = arith.addf %25, %26 : vector<8x256xf32>
    %cst_21 = arith.constant 0.000000e+00 : f32
    %28 = vector.broadcast %cst_21 : f32 to vector<8x256xf32>
    %29 = arith.maximumf %27, %28 : vector<8x256xf32>
    %cst_22 = arith.constant dense<0.000000e+00> : vector<8x256xf32>
    %30 = tpu.matmul %13, %29, %cst_22 {dimension_numbers = #tpu.dot_dimension_numbers<[1], [0], [0], [1], [0, 0, 1, 1], [], []>} : vector<8x8xf32>, vector<8x256xf32>, vector<8x256xf32> -> vector<8x256xf32>
    %31 = vector.extract_strided_slice %3 {offsets = [0, 0], sizes = [8, 8], strides = [1, 1]} : vector<8x24xf32> to vector<8x8xf32>
    %cst_23 = arith.constant dense<0.000000e+00> : vector<8x256xf32>
    %32 = tpu.matmul %31, %5, %cst_23 {dimension_numbers = #tpu.dot_dimension_numbers<[1], [0], [0], [1], [0, 0, 1, 1], [], []>} : vector<8x8xf32>, vector<8x256xf32>, vector<8x256xf32> -> vector<8x256xf32>
    %33 = vector.extract_strided_slice %3 {offsets = [0, 8], sizes = [8, 1], strides = [1, 1]} : vector<8x24xf32> to vector<8x1xf32>
    %34 = vector.extract_strided_slice %3 {offsets = [0, 9], sizes = [8, 1], strides = [1, 1]} : vector<8x24xf32> to vector<8x1xf32>
    %35 = vector.extract_strided_slice %3 {offsets = [0, 10], sizes = [8, 1], strides = [1, 1]} : vector<8x24xf32> to vector<8x1xf32>
    %36 = vector.extract_strided_slice %3 {offsets = [0, 11], sizes = [8, 1], strides = [1, 1]} : vector<8x24xf32> to vector<8x1xf32>
    %37 = vector.extract_strided_slice %3 {offsets = [0, 12], sizes = [8, 1], strides = [1, 1]} : vector<8x24xf32> to vector<8x1xf32>
    %38 = vector.extract_strided_slice %3 {offsets = [0, 13], sizes = [8, 1], strides = [1, 1]} : vector<8x24xf32> to vector<8x1xf32>
    %39 = vector.extract_strided_slice %3 {offsets = [0, 14], sizes = [8, 1], strides = [1, 1]} : vector<8x24xf32> to vector<8x1xf32>
    %40 = vector.extract_strided_slice %3 {offsets = [0, 15], sizes = [8, 1], strides = [1, 1]} : vector<8x24xf32> to vector<8x1xf32>
    %41 = vector.extract_strided_slice %3 {offsets = [0, 16], sizes = [8, 1], strides = [1, 1]} : vector<8x24xf32> to vector<8x1xf32>
    %cst_24 = arith.constant 5.000000e-01 : f32
    %42 = vector.broadcast %cst_24 : f32 to vector<8x1xf32>
    %43 = arith.cmpf olt, %39, %42 : vector<8x1xf32>
    %44 = vector.broadcast %6 : vector<1x256xf32> to vector<8x256xf32>
    %45 = vector.broadcast %33 : vector<8x1xf32> to vector<8x256xf32>
    %46 = arith.cmpf oge, %44, %45 : vector<8x256xf32>
    %47 = vector.broadcast %6 : vector<1x256xf32> to vector<8x256xf32>
    %48 = vector.broadcast %36 : vector<8x1xf32> to vector<8x256xf32>
    %49 = arith.cmpf olt, %47, %48 : vector<8x256xf32>
    %50 = arith.andi %46, %49 : vector<8x256xi1>
    %51 = vector.broadcast %43 : vector<8x1xi1> to vector<8x256xi1>
    %52 = arith.ori %51, %50 : vector<8x256xi1>
    %cst_25 = arith.constant 5.000000e-01 : f32
    %53 = vector.broadcast %cst_25 : f32 to vector<8x1xf32>
    %54 = arith.cmpf olt, %40, %53 : vector<8x1xf32>
    %55 = vector.broadcast %7 : vector<1x256xf32> to vector<8x256xf32>
    %56 = vector.broadcast %34 : vector<8x1xf32> to vector<8x256xf32>
    %57 = arith.cmpf oge, %55, %56 : vector<8x256xf32>
    %58 = vector.broadcast %7 : vector<1x256xf32> to vector<8x256xf32>
    %59 = vector.broadcast %37 : vector<8x1xf32> to vector<8x256xf32>
    %60 = arith.cmpf olt, %58, %59 : vector<8x256xf32>
    %61 = arith.andi %57, %60 : vector<8x256xi1>
    %62 = vector.broadcast %54 : vector<8x1xi1> to vector<8x256xi1>
    %63 = arith.ori %62, %61 : vector<8x256xi1>
    %cst_26 = arith.constant 5.000000e-01 : f32
    %64 = vector.broadcast %cst_26 : f32 to vector<8x1xf32>
    %65 = arith.cmpf olt, %41, %64 : vector<8x1xf32>
    %66 = vector.broadcast %8 : vector<1x256xf32> to vector<8x256xf32>
    %67 = vector.broadcast %35 : vector<8x1xf32> to vector<8x256xf32>
    %68 = arith.cmpf oge, %66, %67 : vector<8x256xf32>
    %69 = vector.broadcast %8 : vector<1x256xf32> to vector<8x256xf32>
    %70 = vector.broadcast %38 : vector<8x1xf32> to vector<8x256xf32>
    %71 = arith.cmpf olt, %69, %70 : vector<8x256xf32>
    %72 = arith.andi %68, %71 : vector<8x256xi1>
    %73 = vector.broadcast %65 : vector<8x1xi1> to vector<8x256xi1>
    %74 = arith.ori %73, %72 : vector<8x256xi1>
    %75 = arith.andi %52, %63 : vector<8x256xi1>
    %76 = arith.andi %75, %74 : vector<8x256xi1>
    %77 = math.absf %32 : vector<8x256xf32>
    %cst_27 = arith.constant 1.000000e-01 : f32
    %78 = vector.broadcast %cst_27 : f32 to vector<8x256xf32>
    %79 = arith.cmpf olt, %77, %78 : vector<8x256xf32>
    %80 = arith.andi %79, %76 : vector<8x256xi1>
    %81 = arith.extui %80 : vector<8x256xi1> to vector<8x256xi32>
    %82 = arith.sitofp %81 : vector<8x256xi32> to vector<8x256xf32>
    %cst_28 = arith.constant dense<0xFF800000> : vector<8xf32>
    %83 = vector.multi_reduction <maximumf>, %82, %cst_28 [1] : vector<8x256xf32> to vector<8xf32>
    %84 = vector.shape_cast %83 : vector<8xf32> to vector<8x1xf32>
    %85 = vector.shape_cast %80 : vector<8x256xi1> to vector<8x1x256xi1>
    %86 = vector.shape_cast %29 : vector<8x256xf32> to vector<1x8x256xf32>
    %cst_29 = arith.constant -1.000000e+30 : f32
    %87 = vector.shape_cast %85 : vector<8x1x256xi1> to vector<8x1x256xi1>
    %88 = vector.broadcast %87 : vector<8x1x256xi1> to vector<8x8x256xi1>
    %89 = vector.shape_cast %86 : vector<1x8x256xf32> to vector<1x8x256xf32>
    %90 = vector.broadcast %89 : vector<1x8x256xf32> to vector<8x8x256xf32>
    %91 = vector.broadcast %cst_29 : f32 to vector<8x8x256xf32>
    %92 = arith.select %88, %90, %91 : vector<8x8x256xi1>, vector<8x8x256xf32>
    %cst_30 = arith.constant dense<0xFF800000> : vector<8x8xf32>
    %93 = vector.multi_reduction <maximumf>, %92, %cst_30 [2] : vector<8x8x256xf32> to vector<8x8xf32>
    %cst_31 = arith.constant 0.000000e+00 : f32
    %94 = vector.broadcast %cst_31 : f32 to vector<8x1xf32>
    %95 = arith.cmpf ogt, %84, %94 : vector<8x1xf32>
    %cst_32 = arith.constant 0.000000e+00 : f32
    %96 = vector.shape_cast %95 : vector<8x1xi1> to vector<8x1xi1>
    %97 = vector.broadcast %96 : vector<8x1xi1> to vector<8x8xi1>
    %98 = vector.broadcast %cst_32 : f32 to vector<8x8xf32>
    %99 = arith.select %97, %93, %98 : vector<8x8xi1>, vector<8x8xf32>
    %cst_33 = arith.constant dense<0.000000e+00> : vector<8x8xf32>
    %100 = tpu.matmul %99, %14, %cst_33 {dimension_numbers = #tpu.dot_dimension_numbers<[1], [0], [0], [1], [0, 0, 1, 1], [], []>} : vector<8x8xf32>, vector<8x8xf32>, vector<8x8xf32> -> vector<8x8xf32>
    %101 = vector.broadcast %17 : vector<1x8xf32> to vector<8x8xf32>
    %102 = arith.addf %100, %101 : vector<8x8xf32>
    %cst_34 = arith.constant 0.000000e+00 : f32
    %103 = vector.broadcast %cst_34 : f32 to vector<8x8xf32>
    %104 = arith.maximumf %102, %103 : vector<8x8xf32>
    %cst_35 = arith.constant dense<0.000000e+00> : vector<8x8xf32>
    %105 = tpu.matmul %104, %15, %cst_35 {dimension_numbers = #tpu.dot_dimension_numbers<[1], [0], [0], [1], [0, 0, 1, 1], [], []>} : vector<8x8xf32>, vector<8x8xf32>, vector<8x8xf32> -> vector<8x8xf32>
    %106 = vector.broadcast %18 : vector<1x8xf32> to vector<8x8xf32>
    %107 = arith.addf %105, %106 : vector<8x8xf32>
    %cst_36 = arith.constant 0.000000e+00 : f32
    %108 = vector.broadcast %cst_36 : f32 to vector<8x8xf32>
    %109 = arith.maximumf %107, %108 : vector<8x8xf32>
    %cst_37 = arith.constant dense<0.000000e+00> : vector<8x256xf32>
    %110 = tpu.matmul %109, %5, %cst_37 {dimension_numbers = #tpu.dot_dimension_numbers<[1], [0], [0], [1], [0, 0, 1, 1], [], []>} : vector<8x8xf32>, vector<8x256xf32>, vector<8x256xf32> -> vector<8x256xf32>
    %111 = arith.addf %110, %32 : vector<8x256xf32>
    %cst_38 = arith.constant 0.000000e+00 : f32
    %112 = vector.broadcast %cst_38 : f32 to vector<8x256xf32>
    %113 = arith.cmpf ogt, %111, %112 : vector<8x256xf32>
    %114 = arith.andi %80, %113 : vector<8x256xi1>
    %cst_39 = arith.constant 0.000000e+00 : f32
    %115 = vector.broadcast %cst_39 : f32 to vector<8x256xf32>
    %116 = arith.cmpf ole, %111, %115 : vector<8x256xf32>
    %117 = arith.andi %80, %116 : vector<8x256xi1>
    %118 = arith.extui %114 : vector<8x256xi1> to vector<8x256xi32>
    %119 = arith.sitofp %118 : vector<8x256xi32> to vector<8x256xf32>
    %120 = vector.shape_cast %114 : vector<8x256xi1> to vector<8x1x256xi1>
    %121 = vector.shape_cast %30 : vector<8x256xf32> to vector<1x8x256xf32>
    %cst_40 = arith.constant -1.000000e+30 : f32
    %122 = vector.shape_cast %120 : vector<8x1x256xi1> to vector<8x1x256xi1>
    %123 = vector.broadcast %122 : vector<8x1x256xi1> to vector<8x8x256xi1>
    %124 = vector.shape_cast %121 : vector<1x8x256xf32> to vector<1x8x256xf32>
    %125 = vector.broadcast %124 : vector<1x8x256xf32> to vector<8x8x256xf32>
    %126 = vector.broadcast %cst_40 : f32 to vector<8x8x256xf32>
    %127 = arith.select %123, %125, %126 : vector<8x8x256xi1>, vector<8x8x256xf32>
    %cst_41 = arith.constant dense<0xFF800000> : vector<8x8xf32>
    %128 = vector.multi_reduction <maximumf>, %127, %cst_41 [2] : vector<8x8x256xf32> to vector<8x8xf32>
    %129 = vector.shape_cast %128 : vector<8x8xf32> to vector<8x8x1xf32>
    %130 = vector.broadcast %129 : vector<8x8x1xf32> to vector<8x8x256xf32>
    %131 = arith.subf %127, %130 : vector<8x8x256xf32>
    %132 = math.exp %131 : vector<8x8x256xf32>
    %133 = vector.shape_cast %119 : vector<8x256xf32> to vector<8x1x256xf32>
    %134 = vector.broadcast %133 : vector<8x1x256xf32> to vector<8x8x256xf32>
    %135 = arith.mulf %132, %134 : vector<8x8x256xf32>
    %cst_42 = arith.constant dense<0.000000e+00> : vector<8x8xf32>
    %136 = vector.multi_reduction <add>, %135, %cst_42 [2] : vector<8x8x256xf32> to vector<8x8xf32>
    %137 = vector.shape_cast %136 : vector<8x8xf32> to vector<8x8x1xf32>
    %cst_43 = arith.constant 1.000000e-30 : f32
    %138 = vector.broadcast %cst_43 : f32 to vector<8x8x1xf32>
    %139 = arith.maximumf %137, %138 : vector<8x8x1xf32>
    %140 = tpu.reciprocal %139 {approx = true} : vector<8x8x1xf32> -> vector<8x8x1xf32>
    %141 = vector.broadcast %140 : vector<8x8x1xf32> to vector<8x8x256xf32>
    %142 = arith.mulf %135, %141 : vector<8x8x256xf32>
    %143 = vector.shape_cast %29 : vector<8x256xf32> to vector<1x8x256xf32>
    %144 = vector.broadcast %143 : vector<1x8x256xf32> to vector<8x8x256xf32>
    %145 = arith.mulf %144, %142 : vector<8x8x256xf32>
    %cst_44 = arith.constant dense<0.000000e+00> : vector<8x8xf32>
    %146 = vector.multi_reduction <add>, %145, %cst_44 [2] : vector<8x8x256xf32> to vector<8x8xf32>
    %cst_45 = arith.constant dense<0.000000e+00> : vector<8x8xf32>
    %147 = tpu.matmul %146, %16, %cst_45 {dimension_numbers = #tpu.dot_dimension_numbers<[1], [0], [0], [1], [0, 0, 1, 1], [], []>} : vector<8x8xf32>, vector<8x8xf32>, vector<8x8xf32> -> vector<8x8xf32>
    %148 = vector.broadcast %19 : vector<1x8xf32> to vector<8x8xf32>
    %149 = arith.addf %147, %148 : vector<8x8xf32>
    %cst_46 = arith.constant 0.000000e+00 : f32
    %150 = vector.broadcast %cst_46 : f32 to vector<8x8xf32>
    %151 = arith.maximumf %149, %150 : vector<8x8xf32>
    %152 = arith.extui %117 : vector<8x256xi1> to vector<8x256xi32>
    %153 = arith.sitofp %152 : vector<8x256xi32> to vector<8x256xf32>
    %154 = vector.shape_cast %117 : vector<8x256xi1> to vector<8x1x256xi1>
    %155 = vector.shape_cast %30 : vector<8x256xf32> to vector<1x8x256xf32>
    %cst_47 = arith.constant -1.000000e+30 : f32
    %156 = vector.shape_cast %154 : vector<8x1x256xi1> to vector<8x1x256xi1>
    %157 = vector.broadcast %156 : vector<8x1x256xi1> to vector<8x8x256xi1>
    %158 = vector.shape_cast %155 : vector<1x8x256xf32> to vector<1x8x256xf32>
    %159 = vector.broadcast %158 : vector<1x8x256xf32> to vector<8x8x256xf32>
    %160 = vector.broadcast %cst_47 : f32 to vector<8x8x256xf32>
    %161 = arith.select %157, %159, %160 : vector<8x8x256xi1>, vector<8x8x256xf32>
    %cst_48 = arith.constant dense<0xFF800000> : vector<8x8xf32>
    %162 = vector.multi_reduction <maximumf>, %161, %cst_48 [2] : vector<8x8x256xf32> to vector<8x8xf32>
    %163 = vector.shape_cast %162 : vector<8x8xf32> to vector<8x8x1xf32>
    %164 = vector.broadcast %163 : vector<8x8x1xf32> to vector<8x8x256xf32>
    %165 = arith.subf %161, %164 : vector<8x8x256xf32>
    %166 = math.exp %165 : vector<8x8x256xf32>
    %167 = vector.shape_cast %153 : vector<8x256xf32> to vector<8x1x256xf32>
    %168 = vector.broadcast %167 : vector<8x1x256xf32> to vector<8x8x256xf32>
    %169 = arith.mulf %166, %168 : vector<8x8x256xf32>
    %cst_49 = arith.constant dense<0.000000e+00> : vector<8x8xf32>
    %170 = vector.multi_reduction <add>, %169, %cst_49 [2] : vector<8x8x256xf32> to vector<8x8xf32>
    %171 = vector.shape_cast %170 : vector<8x8xf32> to vector<8x8x1xf32>
    %cst_50 = arith.constant 1.000000e-30 : f32
    %172 = vector.broadcast %cst_50 : f32 to vector<8x8x1xf32>
    %173 = arith.maximumf %171, %172 : vector<8x8x1xf32>
    %174 = tpu.reciprocal %173 {approx = true} : vector<8x8x1xf32> -> vector<8x8x1xf32>
    %175 = vector.broadcast %174 : vector<8x8x1xf32> to vector<8x8x256xf32>
    %176 = arith.mulf %169, %175 : vector<8x8x256xf32>
    %177 = vector.shape_cast %29 : vector<8x256xf32> to vector<1x8x256xf32>
    %178 = vector.broadcast %177 : vector<1x8x256xf32> to vector<8x8x256xf32>
    %179 = arith.mulf %178, %176 : vector<8x8x256xf32>
    %cst_51 = arith.constant dense<0.000000e+00> : vector<8x8xf32>
    %180 = vector.multi_reduction <add>, %179, %cst_51 [2] : vector<8x8x256xf32> to vector<8x8xf32>
    %cst_52 = arith.constant dense<0.000000e+00> : vector<8x8xf32>
    %181 = tpu.matmul %180, %16, %cst_52 {dimension_numbers = #tpu.dot_dimension_numbers<[1], [0], [0], [1], [0, 0, 1, 1], [], []>} : vector<8x8xf32>, vector<8x8xf32>, vector<8x8xf32> -> vector<8x8xf32>
    %182 = vector.broadcast %19 : vector<1x8xf32> to vector<8x8xf32>
    %183 = arith.addf %181, %182 : vector<8x8xf32>
    %cst_53 = arith.constant 0.000000e+00 : f32
    %184 = vector.broadcast %cst_53 : f32 to vector<8x8xf32>
    %185 = arith.maximumf %183, %184 : vector<8x8xf32>
    %c0_54 = arith.constant 0 : index
    %c0_55 = arith.constant 0 : index
    %c0_56 = arith.constant 0 : index
    %186 = vector.load %arg4[%c0_54, %c0_55, %c0_56] : memref<1x32x256xf32, #tpu.memory_space<vmem>>, vector<1x8x256xf32>
    %187 = vector.shape_cast %186 : vector<1x8x256xf32> to vector<8x256xf32>
    %188 = vector.shape_cast %82 : vector<8x256xf32> to vector<1x8x256xf32>
    tpu.vector_store %arg4[%c0_54, %c0_55, %c0_56], %188 {strides = array<i32>} : memref<1x32x256xf32, #tpu.memory_space<vmem>>, vector<1x8x256xf32>,
    %c0_57 = arith.constant 0 : index
    %c8 = arith.constant 8 : index
    %c0_58 = arith.constant 0 : index
    %189 = vector.load %arg4[%c0_57, %c8, %c0_58] : memref<1x32x256xf32, #tpu.memory_space<vmem>>, vector<1x8x256xf32>
    %190 = vector.shape_cast %189 : vector<1x8x256xf32> to vector<8x256xf32>
    %191 = vector.shape_cast %111 : vector<8x256xf32> to vector<1x8x256xf32>
    tpu.vector_store %arg4[%c0_57, %c8, %c0_58], %191 {strides = array<i32>} : memref<1x32x256xf32, #tpu.memory_space<vmem>>, vector<1x8x256xf32>,
    %192 = arith.extui %114 : vector<8x256xi1> to vector<8x256xi32>
    %193 = arith.sitofp %192 : vector<8x256xi32> to vector<8x256xf32>
    %c0_59 = arith.constant 0 : index
    %c16_60 = arith.constant 16 : index
    %c0_61 = arith.constant 0 : index
    %194 = vector.load %arg4[%c0_59, %c16_60, %c0_61] : memref<1x32x256xf32, #tpu.memory_space<vmem>>, vector<1x8x256xf32>
    %195 = vector.shape_cast %194 : vector<1x8x256xf32> to vector<8x256xf32>
    %196 = vector.shape_cast %193 : vector<8x256xf32> to vector<1x8x256xf32>
    tpu.vector_store %arg4[%c0_59, %c16_60, %c0_61], %196 {strides = array<i32>} : memref<1x32x256xf32, #tpu.memory_space<vmem>>, vector<1x8x256xf32>,
    %197 = arith.extui %117 : vector<8x256xi1> to vector<8x256xi32>
    %198 = arith.sitofp %197 : vector<8x256xi32> to vector<8x256xf32>
    %c0_62 = arith.constant 0 : index
    %c24_63 = arith.constant 24 : index
    %c0_64 = arith.constant 0 : index
    %199 = vector.load %arg4[%c0_62, %c24_63, %c0_64] : memref<1x32x256xf32, #tpu.memory_space<vmem>>, vector<1x8x256xf32>
    %200 = vector.shape_cast %199 : vector<1x8x256xf32> to vector<8x256xf32>
    %201 = vector.shape_cast %198 : vector<8x256xf32> to vector<1x8x256xf32>
    tpu.vector_store %arg4[%c0_62, %c24_63, %c0_64], %201 {strides = array<i32>} : memref<1x32x256xf32, #tpu.memory_space<vmem>>, vector<1x8x256xf32>,
    %c0_65 = arith.constant 0 : index
    %c0_66 = arith.constant 0 : index
    %c0_67 = arith.constant 0 : index
    %202 = vector.load %arg5[%c0_65, %c0_66, %c0_67] : memref<1x24x8xf32, #tpu.memory_space<vmem>>, vector<1x8x8xf32>
    %203 = vector.shape_cast %202 : vector<1x8x8xf32> to vector<8x8xf32>
    %204 = vector.shape_cast %109 : vector<8x8xf32> to vector<1x8x8xf32>
    tpu.vector_store %arg5[%c0_65, %c0_66, %c0_67], %204 {strides = array<i32>} : memref<1x24x8xf32, #tpu.memory_space<vmem>>, vector<1x8x8xf32>,
    %c0_68 = arith.constant 0 : index
    %c8_69 = arith.constant 8 : index
    %c0_70 = arith.constant 0 : index
    %205 = vector.load %arg5[%c0_68, %c8_69, %c0_70] : memref<1x24x8xf32, #tpu.memory_space<vmem>>, vector<1x8x8xf32>
    %206 = vector.shape_cast %205 : vector<1x8x8xf32> to vector<8x8xf32>
    %207 = vector.shape_cast %151 : vector<8x8xf32> to vector<1x8x8xf32>
    tpu.vector_store %arg5[%c0_68, %c8_69, %c0_70], %207 {strides = array<i32>} : memref<1x24x8xf32, #tpu.memory_space<vmem>>, vector<1x8x8xf32>,
    %c0_71 = arith.constant 0 : index
    %c16_72 = arith.constant 16 : index
    %c0_73 = arith.constant 0 : index
    %208 = vector.load %arg5[%c0_71, %c16_72, %c0_73] : memref<1x24x8xf32, #tpu.memory_space<vmem>>, vector<1x8x8xf32>
    %209 = vector.shape_cast %208 : vector<1x8x8xf32> to vector<8x8xf32>
    %210 = vector.shape_cast %185 : vector<8x8xf32> to vector<1x8x8xf32>
    tpu.vector_store %arg5[%c0_71, %c16_72, %c0_73], %210 {strides = array<i32>} : memref<1x24x8xf32, #tpu.memory_space<vmem>>, vector<1x8x8xf32>,
    return
  }
  func.func @transform_0(%arg0: i32) -> (i32, i32, i32) {
    %c0_i32 = arith.constant 0 : i32
    %c0_i32_0 = arith.constant 0 : i32
    %c0_i32_1 = arith.constant 0 : i32
    return %arg0, %c0_i32, %c0_i32_0 : i32, i32, i32
  }
  func.func @transform_1(%arg0: i32) -> (i32, i32, i32) {
    %c0_i32 = arith.constant 0 : i32
    %c0_i32_0 = arith.constant 0 : i32
    %c0_i32_1 = arith.constant 0 : i32
    return %arg0, %c0_i32, %c0_i32_0 : i32, i32, i32
  }
  func.func @transform_2(%arg0: i32) -> (i32, i32) {
    %c0_i32 = arith.constant 0 : i32
    %c0_i32_0 = arith.constant 0 : i32
    %c0_i32_1 = arith.constant 0 : i32
    return %c0_i32, %c0_i32_0 : i32, i32
  }
  func.func @transform_3(%arg0: i32) -> (i32, i32, i32) {
    %c0_i32 = arith.constant 0 : i32
    %c0_i32_0 = arith.constant 0 : i32
    %c0_i32_1 = arith.constant 0 : i32
    return %arg0, %c0_i32, %c0_i32_0 : i32, i32, i32
  }
  func.func @transform_4(%arg0: i32) -> (i32, i32, i32) {
    %c0_i32 = arith.constant 0 : i32
    %c0_i32_0 = arith.constant 0 : i32
    %c0_i32_1 = arith.constant 0 : i32
    return %arg0, %c0_i32, %c0_i32_0 : i32, i32, i32
  }
}

</mosaic_0001>

<bundles_post_ra>
// kernel: tpu_custom_call.1
= control target key start
LH: loop header
LB: loop body
LE: loop exit
PB: predicated region body
PF: predicated region fallthrough
CT: control target
= control target key end

     0   :  { %s4192_s0 = inlined_call_operand.hbm [shape: f32[2,24,256], index: 0, kind: input, shape index: {}]   ;;  %s4193_s1 = inlined_call_operand.hbm [shape: f32[2,8,24], index: 1, kind: input, shape index: {}]   ;;  %s4194_s2 = inlined_call_operand.hbm [shape: f32[64,128], index: 2, kind: input, shape index: {}]   ;;  %s4195_s3 = inlined_call_operand.hbm [shape: f32[2,32,256], index: 3, kind: output, shape index: {0}]   ;;  %s4196_s4 = inlined_call_operand.vmem [shape: f32[2,24,8], index: 4, kind: output, shape index: {1}]  }
   0x1   :  { %4203 = sst [smem:[#allocation15_spill]] %s4192_s0 }
   0x2   :  { %4204 = sst [smem:[#allocation16_spill]] %s4194_s2 }
   0x3   :  { %10 = vsyncpa [#allocation3], 0 }
   0x4   :  { %12 = vsyncpa [#allocation3 + $0x1], 0 }
   0x5   :  { %13 = vsyncpa [#allocation6], 0 }
   0x6   :  { %15 = vsyncpa [#allocation6 + $0x1], 0 }
   0x7   :  { %16 = vsyncpa [#allocation4], 0 }
   0x8   :  { %18 = vsyncpa [#allocation4 + $0x1], 0  ;;  %s3042_s15 = smov 0   ;;  %s3044_s16 = smov 0  }
   0x9   :  { %s3046_s17 = smov 0   ;;  %s3048_s18 = smov 0  }
   0xa LB: > { %4205 = sst [smem:[#allocation13_spill]] %s2988_s17  ;;  %s3063_s19 = sadd.s32 4294967295, %s2992_s18   ;;  %s2992_s18 = sphi %s3048_s18, %s4264_s18   ;;  %s2988_s17 = sphi %s3046_s17, %s4261_s17   ;;  %s2984_s16 = sphi %s3044_s16, %s4263_s16   ;;  %s2980_s15 = sphi %s3042_s15, %s4262_s15  }
   0xb   : > { %s2581_s20 = sadd.s32 4294967294, %s2992_s18   ;;  %p44_p0 = scmp.ne.s32.totalorder %s2984_s16, %s2980_s15 }
   0xc   : > { %p4197_p1 = scmp.eq.s32.totalorder %s3063_s19, 0  ;;  %p121_p3 = scmp.eq.s32.totalorder %s2581_s20, 1 }
   0xd   : > { %p2582_p5 = scmp.ge.s32.totalorder %s2992_s18, 1  ;;  %p154_p7 = scmp.lt.s32.totalorder %s2992_s18, 3 }
   0xe   : > { %p3072_p4 = por %p4197_p1, %p44_p0  ;;  %p3077_p6 = por %p121_p3, %p44_p0 }
   0xf   : > { %p3082_p8 = pnand %p2582_p5, %p154_p7  ;;  %s2994_s24 = smov [#allocation7]  }
  0x10   : > { %s4206_s21 = scalar_select %p3072_p4, 1, 0 }
  0x11   : > { %s4207_s22 = scalar_select %p3077_p6, 1, 0 }
  0x12   : > { %s4208_s23 = scalar_select %p3082_p8, 1, 0 }
  0x13   : > { %s166_s25 = sshll.u32 %s2994_s24, 4  ;;  %p2660_p9 = pneg %p3082_p8  ;;  %s167_s25 = int_to_ptr.vmem [resolvable:$true] %s166_s25 }
  0x14   : > { %s3096_s27 = sadd.s32 1, %s2992_s18   ;;  %s31_s28 = sadd.s32 1, %s2988_s17 }
  0x15   : > { %p3091_p11 = pnand %p2660_p9, %p4197_p1  ;;  %s28_s29 = ssub.s32 %s2992_s18, %s3096_s27 }
  0x16   : > { %s2849_s30 = scalar_lea.vmem %s167_s25, 1024  ;;  %p2857_p5 = scmp.lt.s32.totalorder %s167_s25, %s167_s25 }
  0x17   : > { %p2840_p12 = pneg %p3091_p11  ;;  %p2850_p13 = scmp.ne.s32.totalorder %s167_s25, %s2849_s30 }
  0x18   : > { %p2858_p7 = scmp.lt.s32.totalorder %s2849_s30, %s2849_s30 }
  0x19   : > { %p2852_p0 = pnand %p2850_p13, %p2840_p12 }
  0x1a   : > { %p2859_p10 = por %p2858_p7, %p2857_p5 }
  0x1b   : > { %p2853_p3 = pneg %p2852_p0 }
  0x1d   : > { %p2860_p2 = pnand %p2859_p10, %p2853_p3 }
  0x1f   : > { %2863 = shalt.err (!%p2860_p2)
}
  0x20   : > { %s2995_s5 = smov 128   ;;  %s2996_s6 = smov 8  }
  0x21   : > { %s4210_s2 = sld [smem:[#allocation16_spill]]  ;;  %p29_p9 = scmp.eq.s32.totalorder %s28_s29, 0 }
  0x22   : > { %p38_p12 = scmp.ne.s32.totalorder %s2988_s17, %s2984_s16  ;;  %p39_p10 = scmp.eq.s32.totalorder %s2992_s18, 0 }
  0x23   : > { %p2676_p2 = scmp.lt.s32.totalorder %s2992_s18, 2  ;;  %p4212_p0 = scmp.eq.s32.totalorder %s3063_s19, 1 }
  0x24   : > { %s3113_s9 = scalar_select %p29_p9, %s2988_s17, %s31_s28  }
  0x25   : > { %p40_p13 = por %p39_p10, %p38_p12  ;;  %p3117_p3 = por %p4212_p0, %p38_p12 }
  0x26   : > { %4211 = sst [smem:[#allocation14_spill]] %s3113_s9  ;;  %s3122_s11 = sand.u32 1, %s2988_s17  }
  0x27   : > { %2663 = dma.hbm_to_vmem [thread:$0]  (!%p3091_p11), %s4210_s2, 1024, %s167_s25, [#allocation6], %s2995_s5, %s2995_s5, %s2996_s6  }
  0x28   : > { %s4213_s10 = scalar_select %p3117_p3, 1, 0 }
  0x29   : > { %s2647_s12 = smul.u32 768, %s2992_s18  ;;  %s4214_s0 = sld [smem:[#allocation15_spill]] }
  0x2a   : > { %s2646_s13 = smul.u32 48, %s3122_s11  ;;  %p3131_p11 = pnand %p2676_p2, %p40_p13 }
  0x2b   : > { %s181_s29 = scalar_lea.sflag [#allocation3], %s3122_s11 }
  0x2c   : > { %s184_s26 = scalar_lea.vmem [#allocation2], %s2646_s13  ;;  %p2866_p7 = pneg %p3131_p11 }
  0x2d   : > { %s191_s28 = sshll.u32 %s184_s26, 4  ;;  %s3135_s28 = int_to_ptr.vmem [resolvable:$true] %s191_s28 }
  0x2f   : > { %s3129_s24 = scalar_lea.hbm %s4214_s0, %s2647_s12  ;;  %s2869_s7 = scalar_lea.hbm %s4214_s0, 1536 }
  0x30   : > { %s2864_s30 = scalar_lea.hbm %s3129_s24, 768  ;;  %p2870_p10 = scmp.lt.s32.totalorder %s3129_s24, %s4214_s0 }
  0x31   : > { %p2865_p5 = scmp.ne.s32.totalorder %s3129_s24, %s2864_s30  ;;  %p2871_p2 = scmp.lt.s32.totalorder %s2869_s7, %s2864_s30 }
  0x33   : > { %p2867_p9 = pnand %p2866_p7, %p2865_p5  ;;  %p2872_p13 = por %p2871_p2, %p2870_p10 }
  0x35   : > { %p2868_p12 = pneg %p2867_p9 }
  0x37   : > { %p2873_p0 = pnand %p2872_p13, %p2868_p12 }
  0x39   : > { %2876 = shalt.err (!%p2873_p0)
}
  0x3a   : > { %s2877_s13 = scalar_lea.vmem %s3135_s28, 768  ;;  %s2997_s14 = smov [#allocation2]  }
  0x3b   : > { %p2878_p1 = scmp.ne.s32.totalorder %s3135_s28, %s2877_s13  ;;  %s2882_s20 = sshll.u32 %s2997_s14, 4  ;;  %s2883_s20 = int_to_ptr.vmem [resolvable:$false] %s2882_s20 }
  0x3c   : > { %s2884_s26 = scalar_lea.vmem %s2883_s20, 1536  ;;  %p2885_p6 = scmp.lt.s32.totalorder %s3135_s28, %s2883_s20 }
  0x3d   : > { %p2880_p5 = pnand %p2878_p1, %p2866_p7  ;;  %p2886_p3 = scmp.lt.s32.totalorder %s2884_s26, %s2877_s13 }
  0x3f   : > { %p2881_p9 = pneg %p2880_p5  ;;  %p2887_p4 = por %p2886_p3, %p2885_p6 }
  0x41   : > { %p2888_p10 = pnand %p2887_p4, %p2881_p9 }
  0x43   : > { %2891 = shalt.err (!%p2888_p10)
}
  0x44   : > { %s2998_s30 = smov 256   ;;  %s2999_s5 = smov 16  }
  0x45   : > { %2667 = dma.hbm_to_vmem [thread:$0]  (!%p3131_p11), %s3129_s24, 768, %s3135_s28, %s181_s29, %s2998_s30, %s2998_s30, %s2999_s5  }
  0x46   : > { %s201_s6 = sand.u32 1, %s2992_s18   ;;  %s2586_s7 = sshll.u32 %s3122_s11, 3 }
  0x47   : > { %s2587_s8 = sshll.u32 %s2992_s18, 7  ;;  %s205_s12 = scalar_lea.vmem [#allocation5], %s2586_s7 }
  0x48   : > { %s212_s13 = sshll.u32 %s205_s12, 4  ;;  %s210_s26 = scalar_lea.hbm %s4193_s1, %s2587_s8  ;;  %s213_s13 = int_to_ptr.vmem [resolvable:$true] %s212_s13 }
  0x49   : > { %s202_s0 = scalar_lea.sflag [#allocation6], %s201_s6  ;;  %s2892_s2 = scalar_lea.hbm %s210_s26, 128 }
  0x4a   : > { %p2893_p1 = scmp.ne.s32.totalorder %s210_s26, %s2892_s2  ;;  %s2897_s24 = scalar_lea.hbm %s4193_s1, 256 }
  0x4b   : > { %p2898_p3 = scmp.lt.s32.totalorder %s210_s26, %s4193_s1  ;;  %p2899_p12 = scmp.lt.s32.totalorder %s2897_s24, %s2892_s2 }
  0x4c   : > { %p2895_p4 = pnand %p2893_p1, %p2866_p7 }
  0x4d   : > { %p2900_p2 = por %p2899_p12, %p2898_p3 }
  0x4e   : > { %p2896_p6 = pneg %p2895_p4 }
  0x50   : > { %p2901_p13 = pnand %p2900_p2, %p2896_p6 }
  0x52   : > { %2904 = shalt.err (!%p2901_p13)
}
  0x53   : > { %s2905_s29 = scalar_lea.vmem %s213_s13, 128  ;;  %s3000_s30 = smov [#allocation5]  }
  0x54   : > { %p2906_p0 = scmp.ne.s32.totalorder %s213_s13, %s2905_s29  ;;  %s2910_s5 = sshll.u32 %s3000_s30, 4  ;;  %s2911_s5 = int_to_ptr.vmem [resolvable:$false] %s2910_s5 }
  0x55   : > { %s2912_s17 = scalar_lea.vmem %s2911_s5, 256  ;;  %p2913_p10 = scmp.lt.s32.totalorder %s213_s13, %s2911_s5 }
  0x56   : > { %p2908_p5 = pnand %p2906_p0, %p2866_p7  ;;  %p2914_p1 = scmp.lt.s32.totalorder %s2912_s17, %s2905_s29 }
  0x58   : > { %p2909_p9 = pneg %p2908_p5  ;;  %p2915_p4 = por %p2914_p1, %p2913_p10 }
  0x5a   : > { %p2916_p8 = pnand %p2915_p4, %p2909_p9 }
  0x5c   : > { %2919 = shalt.err (!%p2916_p8)
}
  0x5d   : > { %2670 = dma.hbm_to_vmem [thread:$0]  (!%p3131_p11), %s210_s26, 128, %s213_s13, %s202_s0  }
  0x5e   : > { %p4216_p6 = scmp.ne.s32.totalorder %s4208_s23, 0 }
  0x5f   : > { %s3187_s2 = sand.u32 (!%p4216_p6), 1, %s2984_s16   ;;  %p4217_p7 = scmp.ne.s32.totalorder (!%p4216_p6), %s4206_s21, 0 }
  0x60   : > { %221 = sbr.rel (%p4216_p6) target bundleno = 1984 (0x7c0), region = 32  ;;  %s224_s6 = scalar_lea.sflag (!%p4216_p6), [#allocation3], %s3187_s2 }
  0x61   : > { %s2648_s9 = smul.u32 (!%p4216_p6), 48, %s3187_s2 }
  0x63   : > { %s227_s7 = scalar_lea.vmem (!%p4216_p6), [#allocation2], %s2648_s9 }
  0x65   : > { %2963 = dma.done.wait (%p4217_p7), %s224_s6, 768  }
  0x66   : > { %2965 = vsyncadd (%p4217_p7), %s224_s6, 4294966528  ;;  %s232_s0 = sand.u32 1, %s3063_s19   ;;  %s2589_s23 = sshll.u32 %s3187_s2, 3 }
  0x67   : > { %s233_s25 = scalar_lea.sflag [#allocation6], %s232_s0  ;;  %s3197_s8 = scalar_lea.vmem [#allocation5], %s2589_s23 }
  0x68   : > { %2967 = dma.done.wait (%p4217_p7), %s233_s25, 128  }
  0x69   : > { %2969 = vsyncadd (%p4217_p7), %s233_s25, 4294967168  ;;  %p4218_p8 = scmp.eq.s32.totalorder %s3063_s19, 0 }
  0x6b   : > { %2971 = dma.done.wait (%p4218_p8), [#allocation6], 1024   ;;  %p4219_p11 = pmov %p4218_p8 }
  0x6c   : > { %v3001_v0 = vmov 0.0   ;;  %v3002_v1 = vmov 16   ;;  %v283_v2 = vld [vmem:[%s227_s7 + $0x18] sm:$0xff]  ;;  %v282_v3 = vld [vmem:[%s227_s7 + $0x10] sm:$0xff]  ;;  %v281_v4 = vld [vmem:[%s227_s7 + $0x8] sm:$0xff]  ;;  %vm307_vm0 = vcmask 130048   ;;  %v623_v18 = vlaneseq }
  0x6d   : > { %2973 = vsyncadd (%p4219_p11), [#allocation6], 4294966272  ;;  %376 = vmatprep.mubr.f32.mxu0 %v3001_v0  ;;  %2731 = vset.pattern.permute.xlu0 %v3002_v1  ;;  %v280_v5 = vld [vmem:[%s227_s7] sm:$0xff]  ;;  %v288_v6 = vld [vmem:[#allocation7 + $0x8] sm:$0xff]  ;;  %vm4202_vm1 = vcmask 64512   ;;  %v3003_v11 = vmov 8  }
  0x6e   : > { %464 = vmatprep.mubr.f32.mxu1 %v3001_v0  ;;  %340 = vmatprep.subr.mxu0 %v283_v2  ;;  %v287_v7 = vld [vmem:[#allocation7] sm:$0xff]  ;;  %v3209_v8 = vld [vmem:[%s227_s7 + $0x28] sm:$0xff]  ;;  %v286_v10 = vld [vmem:[%s3197_s8] sm:$0xff]  ;;  %v3004_v12 = vmov 9   ;;  %v3005_v13 = vmov 11   ;;  %v3006_v14 = vmov 0  }
  0x6f   : > { %341 = vmatpush1.msra.mxu0 %v282_v3  ;;  %304 = vperm.xlu0 %2731, %v288_v6   ;;  %v3211_v9 = vld [vmem:[%s227_s7 + $0x20] sm:$0xff]  ;;  %vm622_vm2 = vcmp.lt.f32.partialorder %v286_v10, 0.5  ;;  %v3007_v16 = vmov 15   ;;  %v3008_v17 = vmov 12   ;;  %v3223_v19 = vshrl.u32 %v623_v18, 7  ;;  %s2591_s21 = sshll.u32 %s3187_s2, 6 }
  0x70   : > { %342 = vmatprep.subr.mxu0 %v281_v4  ;;  %2732 = vset.pattern.permute.xlu1 %v3003_v11  ;;  %v645_v15 = vsel %vm622_vm2, 1, %v3006_v14  ;;  %v923_v20 = vand.u32 127, %v623_v18  ;;  %v3009_v21 = vmov 14   ;;  %v3010_v23 = vmov 10   ;;  %v289_v25 = vld [vmem:[#allocation7 + $0x10] sm:$0xff]  ;;  %s3296_s12 = scalar_lea.vmem [#allocation8], %s2591_s21 }
  0x71   : > { %343 = vmatpush1.msra.mxu0 %v280_v5  ;;  %632 = vperm.xlu1 %2732, %v286_v10   ;;  %v3011_v24 = vmov 13   ;;  %v3231_v42 = vsub.s32 0, %v3223_v19  ;;  %v3234_v43 = vsub.s32 1, %v3223_v19  ;;  %v682_v51 = vsub.s32 2, %v3223_v19  ;;  %p275_p3 = scmp.lt.s32.totalorder %s3063_s19, 1  ;;  %s2448_s11 = sshll.u32 %s3296_s12, 4  ;;  %s4139_s11 = int_to_ptr.vmem [resolvable:$true] %s2448_s11 }
  0x72   : > { %2593 = vmatmul.mubr.msk.f32.vlgmr.msra.gmra.mxu0 %vm307_vm0, %v287_v7  ;;  %581 = vmatprep.subr.mxu0 %v3209_v8  ;;  %v3226_v22 = vsub.s32 %v923_v20, %v3223_v19  ;;  %s2617_s28 = sshll.u32 %s3063_s19, 10  ;;  %s2430_s17 = scalar_lea.sflag [#allocation4], %s3187_s2 }
  0x73   : > { %382 = vmatprep.mubr.f32.mxu0 %v3001_v0  ;;  %299 = vperm.xlu0 %2731, %v287_v7   ;;  %v626_v45 = vrot.slane %v3211_v9, %v3231_v42  ;;  %v655_v46 = vrot.slane %v3211_v9, %v3234_v43  ;;  %v630_v48 = vrot.slane %v3209_v8, %v3231_v42  ;;  %s276_s13 = scalar_select %p275_p3, %s3063_s19, 1 }
  0x74   : > { %582 = vmatpush1.msra.mxu0 %v3211_v9  ;;  %v659_v50 = vrot.slane %v3209_v8, %v3234_v43  ;;  %v683_v54 = vrot.slane %v3211_v9, %v682_v51  ;;  %v687_v55 = vrot.slane %v3209_v8, %v682_v51  ;;  %s4145_s5 = scalar_lea.hbm %s4195_s3, %s2617_s28  ;;  %s2920_s9 = scalar_lea.vmem %s4139_s11, 1024 }
  0x75   : > { %2631 = vmatprep.subr.mxu0 %v3001_v0  ;;  %2733 = vset.pattern.permute.xlu1 %v3005_v13  ;;  %s2649_s14 = smul.u32 24, %s276_s13  ;;  %p2921_p12 = scmp.ne.s32.totalorder %s4139_s11, %s2920_s9 }
  0x76   : > { %2594 = vmatmul.mubr.msk.f32.gmra.mxu0 %vm307_vm0, %v288_v6  ;;  %638 = vperm.xlu1 %2733, %v286_v10   ;;  %p4255_p2 = scmp.ne.s32.totalorder %s4213_s10, 0  ;;  %s3014_s6 = smov [#allocation8]  }
  0x77   : > { %615 = vmatprep.mubr.f32.mxu0 %v3001_v0  ;;  %2734 = vset.pattern.permute.xlu0 %v3004_v12  ;;  %s3449_s24 = scalar_lea.vmem %s4196_s4, %s2649_s14  ;;  %s2924_s7 = sshll.u32 %s3014_s6, 4  ;;  %s2925_s7 = int_to_ptr.vmem [resolvable:$false] %s2924_s7 }
  0x78   : > { %661 = vperm.xlu0 %2734, %v286_v10   ;;  %p2922_p13 = pnand %p2921_p12, %p4255_p2  ;;  %s2926_s0 = scalar_lea.vmem %s2925_s7, 2048 }
  0x79   : > { %p2927_p5 = scmp.lt.s32.totalorder %s4139_s11, %s2925_s7  ;;  %p2928_p9 = scmp.lt.s32.totalorder %s2926_s0, %s2920_s9 }
  0x7a   : > { %2597 = vmatmul.mubr.msk.f32.vlgmr.msra.gmra.mxu0 %vm4202_vm1, %v286_v10  ;;  %2735 = vset.pattern.permute.xlu1 %v3008_v17  ;;  %p2923_p0 = pneg %p2922_p13 }
  0x7b   : > { %667 = vperm.xlu1 %2735, %v286_v10   ;;  %p2929_p10 = por %p2928_p9, %p2927_p5 }
  0x7c   : > { %2737 = vset.pattern.permute.xlu0 %v3007_v16 }
  0x7d   : > { %675 = vperm.xlu0 %2737, %v645_v15   ;;  %p2930_p1 = pnand %p2929_p10, %p2923_p0 }
  0x7f   : > { %2736 = vset.pattern.permute.xlu1 %v3009_v21 }
  0x80   : > { %647 = vperm.xlu1 %2736, %v645_v15  }
  0x81   : > { %2740 = vset.pattern.permute.xlu0 %v3002_v1 }
  0x82   : > { %703 = vperm.xlu0 %2740, %v645_v15  }
  0x84   : > { %2738 = vset.pattern.permute.xlu1 %v3010_v23 }
  0x85   : > { %689 = vperm.xlu1 %2738, %v286_v10  }
  0x89   : > { %2739 = vset.pattern.permute.xlu1 %v3011_v24 }
  0x8a   : > { %695 = vperm.xlu1 %2739, %v286_v10   ;;  %v3012_v10 = vmov 1966171168  }
  0x8b   : > { %v728_v11 = vunpack.c.l.s4 %v3012_v10 }
  0x8d   : > { %v729_v12 = vunpack.c.0.s8 %v728_v11 }
  0x8e   : > { %2741 = vset.pattern.permute.xlu1 %v3002_v1 }
  0x8f   : > { %395 = vperm.xlu1 %2741, %v289_v25   ;;  %v3311_v16 = vsub.s32 %v729_v12, %v3223_v19 }
  0xea   : > { %v305_v26 = vpop.permute.xlu0 %304 }
  0xec   : > { %v633_v40 = vpop.permute.xlu1 %632 }
  0xed   : > { %vm635_vm3 = vcmp.ge.f32.partialorder %v626_v45, %v633_v40  ;;  %vm636_vm7 = vcmp.ge.f32.partialorder %v630_v48, %v633_v40 }
  0xee   : > { %v300_v30 = vpop.permute.xlu0 %299 }
  0xf1   : > { %v639_v41 = vpop.permute.xlu1 %638 }
  0xf2   : > { %vm641_vm4 = vcmp.lt.f32.partialorder %v626_v45, %v639_v41  ;;  %vm642_vm8 = vcmp.lt.f32.partialorder %v630_v48, %v639_v41 }
  0xf3   : > { %v662_v47 = vpop.permute.xlu0 %661  ;;  %vm643_vm10 = vmand %vm635_vm3, %vm641_vm4 }
  0xf4   : > { %vm664_vm6 = vcmp.ge.f32.partialorder %v655_v46, %v662_v47  ;;  %vm665_vm11 = vcmp.ge.f32.partialorder %v659_v50, %v662_v47  ;;  %vm644_vm14 = vmand %vm636_vm7, %vm642_vm8 }
  0xf6   : > { %v668_v44 = vpop.permute.xlu1 %667 }
  0xf7   : > { %vm670_vm5 = vcmp.lt.f32.partialorder %v655_v46, %v668_v44  ;;  %vm671_vm9 = vcmp.lt.f32.partialorder %v659_v50, %v668_v44 }
  0xf8   : > { %v676_v53 = vpop.permute.xlu0 %675  ;;  %vm672_vm12 = vmand %vm664_vm6, %vm670_vm5 }
  0xf9   : > { %vm677_vm13 = vcmp.eq.s32.totalorder %v676_v53, 1 }
  0xfa   : > { %vm3247_vm2 = vmor %vm677_vm13, %vm672_vm12 }
  0xfb   : > { %v648_v49 = vpop.permute.xlu1 %647 }
  0xfc   : > { %vm649_vm15 = vcmp.eq.s32.totalorder %v648_v49, 1 }
  0xfd   : > { %vm3251_vm1 = vmor %vm649_vm15, %vm643_vm10  ;;  %v704_v61 = vpop.permute.xlu0 %703 }
  0xfe   : > { %vm3261_vm6 = vmor %vm649_vm15, %vm644_vm14 }
 0x100   : > { %v690_v52 = vpop.permute.xlu1 %689 }
 0x101   : > { %vm692_vm3 = vcmp.ge.f32.partialorder %v683_v54, %v690_v52  ;;  %vm693_vm7 = vcmp.ge.f32.partialorder %v687_v55, %v690_v52 }
 0x105   : > { %v696_v59 = vpop.permute.xlu1 %695 }
 0x106   : > { %vm698_vm5 = vcmp.lt.f32.partialorder %v683_v54, %v696_v59  ;;  %vm699_vm8 = vcmp.lt.f32.partialorder %v687_v55, %v696_v59 }
 0x107   : > { %vm700_vm10 = vmand %vm692_vm3, %vm698_vm5 }
 0x108   : > { %vm701_vm12 = vmand %vm693_vm7, %vm699_vm8 }
 0x132   : > { %v378_v27 = vpop.f32.mrf.mxu0 }
 0x133   : > { %v379_v35 = vadd.f32 %v378_v27, %v300_v30 }
 0x134   : > { %v380_v28 = vpop.f32.mrf.mxu0 }
 0x135   : > { %v381_v33 = vadd.f32 %v380_v28, %v300_v30  ;;  %v389_v39 = vmax.f32 %v379_v35, 0.0 }
 0x136   : > { %v384_v29 = vpop.f32.mrf.mxu0 }
 0x137   : > { %v385_v31 = vadd.f32 %v384_v29, %v305_v26  ;;  %v390_v38 = vmax.f32 %v381_v33, 0.0 }
 0x138   : > { %v386_v32 = vpop.f32.mrf.mxu0 }
 0x139   : > { %v387_v34 = vadd.f32 %v386_v32, %v305_v26  ;;  %v391_v37 = vmax.f32 %v385_v31, 0.0  ;;  %v396_v31 = vpop.permute.xlu1 %395 }
 0x13a   : > { %v3255_v58 = vpop.f32.mrf.mxu0 }
 0x13b   : > { %v392_v36 = vmax.f32 %v387_v34, 0.0  ;;  %v712_v1 = vand.u32 2147483647, %v3255_v58 }
 0x13c   : > { %v3269_v63 = vpop.f32.mrf.mxu0 }
 0x13d   : > { %428 = vmatprep.subr.mxu1 %v392_v36  ;;  %v713_v2 = vand.u32 2147483647, %v3269_v63 }
 0x13e   : > { %429 = vmatpush1.msra.mxu1 %v391_v37 }
 0x13f   : > { %430 = vmatprep.subr.mxu1 %v390_v38  ;;  %vm715_vm3 = vcmp.lt.f32.partialorder %v713_v2, 0.1 }
 0x140   : > { %431 = vmatpush1.msra.mxu1 %v389_v39 }
 0x141   : > { %2595 = vmatmul.mubr.msk.f32.vlgmr.msra.gmra.mxu1 %vm307_vm0, %v289_v25  ;;  %vm673_vm0 = vmand %vm665_vm11, %vm671_vm9  ;;  %vm705_vm11 = vcmp.eq.s32.totalorder %v704_v61, 1 }
 0x142   : > { %541 = vmatprep.mubr.f32.mxu1 %v3001_v0  ;;  %vm3257_vm4 = vmor %vm677_vm13, %vm673_vm0  ;;  %vm714_vm0 = vcmp.lt.f32.partialorder %v712_v1, 0.1 }
 0x143   : > { %vm708_vm9 = vmand %vm3251_vm1, %vm3247_vm2 }
 0x144   : > { %vm709_vm13 = vmand %vm3261_vm6, %vm3257_vm4 }
 0x145   : > { %vm706_vm14 = vmor %vm705_vm11, %vm700_vm10 }
 0x146   : > { %vm707_vm15 = vmor %vm705_vm11, %vm701_vm12 }
 0x147   : > { %vm710_vm1 = vmand %vm708_vm9, %vm706_vm14 }
 0x148   : > { %vm711_vm2 = vmand %vm709_vm13, %vm707_vm15 }
 0x149   : > { %vm3277_vm5 = vmand %vm714_vm0, %vm710_vm1 }
 0x14a   : > { %vm3281_vm7 = vmand %vm715_vm3, %vm711_vm2  ;;  %v3289_v5 = vsel %vm3277_vm5, 1.0, %v3001_v0  ;;  %v718_v13 = vsel %vm3277_vm5, 1, %v3006_v14 }
 0x14b   : > { %v3294_v6 = vsel %vm3281_vm7, 1.0, %v3001_v0  ;;  %2418 = vst [vmem:[%s3296_s12] sm:$0xff] %v3289_v5  ;;  %v719_v15 = vsel %vm3281_vm7, 1, %v3006_v14 }
 0x14c   : > { %2419 = vst [vmem:[%s3296_s12 + $0x8] sm:$0xff] %v3294_v6  ;;  %v722_v7 = vmax.f32 %v3289_v5, %v3294_v6  ;;  %v725_v17 = vcombine.low %v718_v13, %v719_v15  ;;  %v726_v21 = vcombine.high %v718_v13, %v719_v15 }
 0x14e   : > { %v733_v18 = vrot.slane %v725_v17, %v3311_v16  ;;  %v740_v25 = vrot.slane %v726_v21, %v3311_v16 }
 0x150   : > { %v741_v20 = vcombine.high %v733_v18, %v733_v18  ;;  %v749_v23 = vrot.slane %v733_v18, %v3311_v16  ;;  %v742_v28 = vcombine.high %v740_v25, %v740_v25  ;;  %v756_v29 = vrot.slane %v740_v25, %v3311_v16 }
 0x152   : > { %v763_v24 = vrot.slane %v741_v20, %v3311_v16  ;;  %v771_v26 = vcombine.high %v749_v23, %v749_v23  ;;  %vm775_vm4 = vcmp.ne.s32.totalorder %v749_v23, 0  ;;  %v770_v33 = vrot.slane %v742_v28, %v3311_v16 }
 0x153   : > { %v783_v19 = vsel %vm775_vm4, 1, %v3006_v14  ;;  %vm779_vm10 = vcmp.ne.s32.totalorder %v756_v29, 0  ;;  %v772_v44 = vcombine.high %v756_v29, %v756_v29 }
 0x154   : > { %v773_v27 = vcombine.high %v763_v24, %v763_v24  ;;  %vm776_vm6 = vcmp.ne.s32.totalorder %v763_v24, 0  ;;  %vm777_vm8 = vcmp.ne.s32.totalorder %v771_v26, 0  ;;  %v794_v34 = vrot.slane %v783_v19, %v3231_v42 }
 0x155   : > { %v784_v30 = vsel %vm776_vm6, 1, %v3006_v14  ;;  %v785_v32 = vsel %vm777_vm8, 1, %v3006_v14  ;;  %v798_v39 = vrot.slane %v783_v19, %v3234_v43  ;;  %vm780_vm11 = vcmp.ne.s32.totalorder %v770_v33, 0 }
 0x156   : > { %vm778_vm9 = vcmp.ne.s32.totalorder %v773_v27, 0  ;;  %v802_v37 = vrot.slane %v784_v30, %v3231_v42  ;;  %v806_v38 = vrot.slane %v784_v30, %v3234_v43  ;;  %v814_v41 = vrot.slane %v785_v32, %v3234_v43 }
 0x157   : > { %v786_v35 = vsel %vm778_vm9, 1, %v3006_v14  ;;  %v774_v47 = vcombine.high %v770_v33, %v770_v33  ;;  %vm3331_vm12 = vcmp.eq.s32.totalorder %v794_v34, 1  ;;  %v787_v51 = vsel %vm779_vm10, 1, %v3006_v14 }
 0x158   : > { %v822_v46 = vrot.slane %v786_v35, %v3234_v43  ;;  %vm3336_vm13 = vcmp.eq.s32.totalorder %v802_v37, 1  ;;  %vm3340_vm14 = vcmp.eq.s32.totalorder %v806_v38, 1  ;;  %vm3344_vm15 = vcmp.eq.s32.totalorder %v798_v39, 1 }
 0x159   : > { %v810_v55 = vrot.slane %v785_v32, %v3231_v42  ;;  %vm3351_vm0 = vcmp.eq.s32.totalorder %v814_v41, 1  ;;  %v788_v59 = vsel %vm780_vm11, 1, %v3006_v14  ;;  %vm781_vm1 = vcmp.ne.s32.totalorder %v772_v44, 0 }
 0x15a   : > { %v818_v61 = vrot.slane %v786_v35, %v3231_v42  ;;  %vm3360_vm2 = vcmp.eq.s32.totalorder %v822_v46, 1  ;;  %vm782_vm3 = vcmp.ne.s32.totalorder %v774_v47, 0  ;;  %v830_v11 = vrot.slane %v787_v51, %v3234_v43  ;;  %v290_v47 = vld [vmem:[#allocation7 + $0x18] sm:$0xff] }
 0x15b   : > { %v838_v15 = vrot.slane %v788_v59, %v3234_v43  ;;  %v789_v17 = vsel %vm781_vm1, 1, %v3006_v14  ;;  %v790_v21 = vsel %vm782_vm3, 1, %v3006_v14  ;;  %vm859_vm4 = vcmp.eq.s32.totalorder %v810_v55, 1 }
 0x15c   : > { %vm861_vm6 = vcmp.eq.s32.totalorder %v818_v61, 1  ;;  %v826_v23 = vrot.slane %v787_v51, %v3231_v42  ;;  %v834_v24 = vrot.slane %v788_v59, %v3231_v42  ;;  %vm3390_vm8 = vcmp.eq.s32.totalorder %v830_v11, 1 }
 0x15d   : > { %v846_v28 = vrot.slane %v789_v17, %v3234_v43  ;;  %vm866_vm9 = vcmp.eq.s32.totalorder %v838_v15, 1  ;;  %v854_v30 = vrot.slane %v790_v21, %v3234_v43  ;;  %v842_v33 = vrot.slane %v789_v17, %v3231_v42 }
 0x15e   : > { %vm863_vm10 = vcmp.eq.s32.totalorder %v826_v23, 1  ;;  %vm865_vm11 = vcmp.eq.s32.totalorder %v834_v24, 1  ;;  %v850_v34 = vrot.slane %v790_v21, %v3231_v42  ;;  %vm3013_vm1 = vmmov 0   ;;  %v292_v21 = vld [vmem:[#allocation7 + $0x28] sm:$0xff] }
 0x15f   : > { %2633 = vmatprep.mubr.msk.f32.mxu0 %vm3013_vm1, %v3001_v0  ;;  %vm958_vm3 = vcmask 1042434   ;;  %2632 = vmatpush3.msra.mxu0 %v292_v21 }
 0x160   : > { %2636 = vmatprep.subr.mxu0 %v3001_v0 }
 0x201   : > { %v466_v36 = vpop.f32.mrf.mxu1 }
 0x202   : > { %v467_v40 = vadd.f32 %v466_v36, %v396_v31 }
 0x203   : > { %v468_v45 = vpop.f32.mrf.mxu1 }
 0x204   : > { %v3329_v48 = vmax.f32 %v467_v40, 0.0  ;;  %v469_v49 = vadd.f32 %v468_v45, %v396_v31 }
 0x206   : > { %v3349_v56 = vmax.f32 %v469_v49, 0.0  ;;  %v873_v60 = vsel %vm3336_vm13, %v3329_v48, -1e+30  ;;  %v871_v2 = vsel %vm3331_vm12, %v3329_v48, -1e+30  ;;  %vm868_vm12 = vcmp.eq.s32.totalorder %v846_v28, 1 }
 0x207   : > { %v875_v25 = vsel %vm859_vm4, %v3329_v48, -1e+30  ;;  %v877_v26 = vsel %vm861_vm6, %v3329_v48, -1e+30  ;;  %v879_v35 = vsel %vm863_vm10, %v3329_v48, -1e+30 }
 0x208   : > { %507 = vmatprep.subr.mxu1 %v3349_v56  ;;  %v874_v1 = vsel %vm3340_vm14, %v3349_v56, -1e+30  ;;  %v872_v10 = vsel %vm3344_vm15, %v3349_v56, -1e+30  ;;  %v876_v18 = vsel %vm3351_vm0, %v3349_v56, -1e+30 }
 0x209   : > { %508 = vmatpush1.msra.mxu1 %v3329_v48  ;;  %v890_v12 = vmax.f32 %v873_v60, %v874_v1  ;;  %v887_v13 = vmax.f32 %v871_v2, %v872_v10  ;;  %v878_v20 = vsel %vm3360_vm2, %v3349_v56, -1e+30  ;;  %v893_v19 = vmax.f32 %v875_v25, %v876_v18  ;;  %v291_v49 = vld [vmem:[#allocation7 + $0x20] sm:$0xff]  ;;  %v2600_v25 = vld [vmem:[#allocation7 + $0x38] ss:$0 sm:$0xff] }
 0x20a   : > { %2626 = vmatprep.subr.mxu1 %v3001_v0  ;;  %v896_v29 = vmax.f32 %v877_v26, %v878_v20  ;;  %v880_v31 = vsel %vm3390_vm8, %v3349_v56, -1e+30  ;;  %v882_v32 = vsel %vm866_vm9, %v3349_v56, -1e+30  ;;  %v881_v36 = vsel %vm865_vm11, %v3329_v48, -1e+30 }
 0x20b   : > { %891 = vmax.xlane.f32.xlu0 %v890_v12  ;;  %888 = vmax.xlane.f32.xlu1 %v887_v13  ;;  %v899_v37 = vmax.f32 %v879_v35, %v880_v31  ;;  %v902_v38 = vmax.f32 %v881_v36, %v882_v32  ;;  %vm870_vm13 = vcmp.eq.s32.totalorder %v854_v30, 1  ;;  %v884_v39 = vsel %vm868_vm12, %v3349_v56, -1e+30 }
 0x20c   : > { %v886_v40 = vsel %vm870_vm13, %v3349_v56, -1e+30  ;;  %vm867_vm14 = vcmp.eq.s32.totalorder %v842_v33, 1  ;;  %vm869_vm15 = vcmp.eq.s32.totalorder %v850_v34, 1  ;;  %vm4246_vm0 = vcmask 64512  }
 0x20d   : > { %v883_v41 = vsel %vm867_vm14, %v3329_v48, -1e+30  ;;  %v885_v44 = vsel %vm869_vm15, %v3329_v48, -1e+30  ;;  %2596 = vmatmul.mubr.msk.f32.vlgmr.msra.gmra.mxu1 %vm4246_vm0, %v290_v47  ;;  %vm956_vm2 = vcmask 1041409   ;;  %vm960_vm4 = vcmask 1043459   ;;  %vm4247_vm12 = vmmov %vm4246_vm0 }
 0x20e   : > { %v905_v45 = vmax.f32 %v883_v41, %v884_v39  ;;  %v908_v46 = vmax.f32 %v885_v44, %v886_v40  ;;  %2627 = vmatpush3.msra.mxu1 %v291_v49  ;;  %2628 = vmatprep.mubr.msk.f32.mxu1 %vm3013_vm1, %v3001_v0  ;;  %vm962_vm6 = vcmask 1044484   ;;  %vm964_vm8 = vcmask 1045509   ;;  %vm4248_vm13 = vmmov %vm4246_vm0 }
 0x20f   : > { %894 = vmax.xlane.f32.xlu0 %v893_v19  ;;  %897 = vmax.xlane.f32.xlu1 %v896_v29  ;;  %vm966_vm9 = vcmask 1046534   ;;  %vm968_vm10 = vcmask 1047559   ;;  %vm4249_vm14 = vmmov %vm4246_vm0 }
 0x210   : > { %1161 = vmatprep.subr.mxu1 %v3209_v8  ;;  %vm4250_vm15 = vmmov %vm4246_vm0 }
 0x213   : > { %900 = vmax.xlane.f32.xlu0 %v899_v37  ;;  %903 = vmax.xlane.f32.xlu1 %v902_v38 }
 0x217   : > { %906 = vmax.xlane.f32.xlu0 %v905_v45  ;;  %909 = vmax.xlane.f32.xlu1 %v908_v46 }
 0x21b   : > { %723 = vmax.xlane.f32.xlu0 %v722_v7 }
 0x294   : > { %v892_v50 = vpop.xlane.xlu0 %891  ;;  %v889_v51 = vpop.xlane.xlu1 %888 }
 0x295   : > { %v931_v52 = vrot.slane %v892_v50, %v3226_v22  ;;  %v927_v5 = vrot.slane %v889_v51, %v3226_v22 }
 0x297   : > { %v957_v8 = vsel %vm956_vm2, %v931_v52, %v927_v5 }
 0x298   : > { %v895_v6 = vpop.xlane.xlu0 %894  ;;  %v898_v7 = vpop.xlane.xlu1 %897 }
 0x299   : > { %v935_v53 = vrot.slane %v895_v6, %v3226_v22  ;;  %v939_v54 = vrot.slane %v898_v7, %v3226_v22 }
 0x29b   : > { %v959_v55 = vsel %vm958_vm3, %v935_v53, %v957_v8 }
 0x29c   : > { %v901_v57 = vpop.xlane.xlu0 %900  ;;  %v904_v59 = vpop.xlane.xlu1 %903  ;;  %v961_v61 = vsel %vm960_vm4, %v939_v54, %v959_v55 }
 0x29d   : > { %v943_v60 = vrot.slane %v901_v57, %v3226_v22  ;;  %v947_v62 = vrot.slane %v904_v59, %v3226_v22 }
 0x29f   : > { %v963_v1 = vsel %vm962_vm6, %v943_v60, %v961_v61 }
 0x2a0   : > { %v907_v2 = vpop.xlane.xlu0 %906  ;;  %v910_v10 = vpop.xlane.xlu1 %909  ;;  %v965_v13 = vsel %vm964_vm8, %v947_v62, %v963_v1 }
 0x2a1   : > { %v951_v11 = vrot.slane %v907_v2, %v3226_v22  ;;  %v955_v12 = vrot.slane %v910_v10, %v3226_v22 }
 0x2a3   : > { %v967_v15 = vsel %vm966_vm9, %v951_v11, %v965_v13 }
 0x2a4   : > { %v724_v17 = vpop.xlane.xlu0 %723  ;;  %v969_v18 = vsel %vm968_vm10, %v955_v12, %v967_v15 }
 0x2a5   : > { %vm911_vm11 = vcmp.gt.f32.partialorder %v724_v17, 0.0 }
 0x2a6   : > { %v971_v20 = vsel %vm911_vm11, %v969_v18, 0.0 }
 0x2a7   : > { %2629 = vmatmul.mubr.msk.f32.vlgmr.msra.gmra.mxu1 %vm4247_vm12, %v971_v20 }
 0x2a8   : > { %1162 = vmatpush1.msra.mxu1 %v3211_v9  ;;  %1195 = vmatprep.mubr.f32.mxu1 %v3001_v0  ;;  %v2602_v9 = vld [vmem:[#allocation7 + $0x39] ss:$0 sm:$0xff] }
 0x2a9   : > { %2641 = vmatprep.subr.mxu1 %v3001_v0 }
 0x2cd   : > { %v3437_v23 = vpop.f32.mrf.mxu1 }
 0x2cf   : > { %v3439_v24 = vpop.f32.mrf.mxu1 }
 0x367   : > { %v1045_v26 = vpop.f32.mrf.mxu1 }
 0x368   : > { %v1046_v27 = vadd.f32 %v2600_v25, %v1045_v26 }
 0x369   : > { %v2630_v28 = vpop.f32.mrf.mxu1 }
 0x36a   : > { %v1049_v19 = vmax.f32 %v1046_v27, 0.0 }
 0x36c   : > { %2634 = vmatmul.mubr.msk.f32.vlgmr.msra.gmra.mxu0 %vm4248_vm13, %v1049_v19 }
 0x36d   : > { %2638 = vmatprep.mubr.msk.f32.mxu0 %vm3013_vm1, %v3001_v0 }
 0x42c   : > { %v1123_v29 = vpop.f32.mrf.mxu0 }
 0x42d   : > { %v1124_v30 = vadd.f32 %v2602_v9, %v1123_v29 }
 0x42e   : > { %v2635_v31 = vpop.f32.mrf.mxu0 }
 0x42f   : > { %v1127_v32 = vmax.f32 %v1124_v30, 0.0 }
 0x431   : > { %2426 = vst.msk [vmem:[%s3449_s24] sm:$0xff] %vm4249_vm14, %v1127_v32  ;;  %2604 = vmatmul.mubr.msk.f32.vlgmr.msra.gmra.mxu1 %vm4250_vm15, %v1127_v32 }
 0x432   : > { %2643 = vmatprep.mubr.msk.f32.mxu1 %vm3013_vm1, %v3001_v0 }
 0x4f1   : > { %v1197_v33 = vpop.f32.mrf.mxu1 }
 0x4f2   : > { %v1198_v34 = vadd.f32 %v1197_v33, %v3255_v58 }
 0x4f3   : > { %v1199_v35 = vpop.f32.mrf.mxu1 }
 0x4f4   : > { %vm1202_vm0 = vcmp.gt.f32.partialorder %v1198_v34, 0.0  ;;  %vm1206_vm11 = vcmp.le.f32.partialorder %v1198_v34, 0.0  ;;  %2420 = vst [vmem:[%s3296_s12 + $0x10] sm:$0xff] %v1198_v34  ;;  %v1200_v36 = vadd.f32 %v1199_v35, %v3269_v63 }
 0x4f5   : > { %vm1204_vm12 = vmand %vm3277_vm5, %vm1202_vm0 }
 0x4f6   : > { %vm3463_vm13 = vmand %vm3277_vm5, %vm1206_vm11  ;;  %v3468_v38 = vsel %vm1204_vm12, 1.0, %v3001_v0  ;;  %vm1203_vm1 = vcmp.gt.f32.partialorder %v1200_v36, 0.0  ;;  %vm1207_vm14 = vcmp.le.f32.partialorder %v1200_v36, 0.0  ;;  %2421 = vst [vmem:[%s3296_s12 + $0x18] sm:$0xff] %v1200_v36  ;;  %v1210_v63 = vsel %vm1204_vm12, 1, %v3006_v14 }
 0x4f7   : > { %v3474_v58 = vsel %vm3463_vm13, 1.0, %v3001_v0  ;;  %2422 = vst [vmem:[%s3296_s12 + $0x20] sm:$0xff] %v3468_v38  ;;  %vm1205_vm5 = vmand %vm3281_vm7, %vm1203_vm1  ;;  %v1816_v4 = vsel %vm3463_vm13, 1, %v3006_v14 }
 0x4f8   : > { %2424 = vst [vmem:[%s3296_s12 + $0x30] sm:$0xff] %v3474_v58  ;;  %vm1209_vm15 = vmand %vm3281_vm7, %vm1207_vm14  ;;  %v1211_v3 = vsel %vm1205_vm5, 1, %v3006_v14  ;;  %v3487_v39 = vsel %vm1205_vm5, 1.0, %v3001_v0 }
 0x4f9   : > { %v1214_v40 = vcombine.low %v1210_v63, %v1211_v3  ;;  %v1215_v41 = vcombine.high %v1210_v63, %v1211_v3  ;;  %v1450_v44 = vcombine.low %v3468_v38, %v3487_v39  ;;  %v1451_v45 = vcombine.high %v3468_v38, %v3487_v39  ;;  %2423 = vst [vmem:[%s3296_s12 + $0x28] sm:$0xff] %v3487_v39 }
 0x4fa   : > { %v1817_v46 = vsel %vm1209_vm15, 1, %v3006_v14  ;;  %v3500_v47 = vsel %vm1209_vm15, 1.0, %v3001_v0 }
 0x4fb   : > { %v1820_v49 = vcombine.low %v1816_v4, %v1817_v46  ;;  %v1821_v50 = vcombine.high %v1816_v4, %v1817_v46  ;;  %2425 = vst [vmem:[%s3296_s12 + $0x38] sm:$0xff] %v3500_v47  ;;  %v2056_v51 = vcombine.low %v3474_v58, %v3500_v47  ;;  %v2057_v52 = vcombine.high %v3474_v58, %v3500_v47 }
 0x4fc   : > { %v1222_v5 = vrot.slane %v1214_v40, %v3311_v16  ;;  %v3510_v6 = vrot.slane %v1215_v41, %v3311_v16 }
 0x4fd   : > { %v3513_v7 = vrot.slane %v1821_v50, %v3311_v16  ;;  %v1828_v0 = vrot.slane %v1820_v49, %v3311_v16 }
 0x4fe   : > { %v1238_v53 = vrot.slane %v1222_v5, %v3311_v16  ;;  %v1230_v8 = vcombine.high %v1222_v5, %v1222_v5  ;;  %v3526_v57 = vrot.slane %v3510_v6, %v3311_v16  ;;  %v1231_v62 = vcombine.high %v3510_v6, %v3510_v6 }
 0x4ff   : > { %v3519_v54 = vrot.slane %v3513_v7, %v3311_v16  ;;  %v3522_v55 = vrot.slane %v1828_v0, %v3311_v16  ;;  %v1836_v59 = vcombine.high %v1828_v0, %v1828_v0 }
 0x500   : > { %vm1264_vm7 = vcmp.ne.s32.totalorder %v1238_v53, 0  ;;  %v3529_v60 = vrot.slane %v1230_v8, %v3311_v16  ;;  %v1260_v61 = vcombine.high %v1238_v53, %v1238_v53  ;;  %vm1268_vm12 = vcmp.ne.s32.totalorder %v3526_v57, 0 }
 0x501   : > { %vm1874_vm0 = vcmp.ne.s32.totalorder %v3519_v54, 0  ;;  %v1272_v1 = vsel %vm1264_vm7, 1, %v3006_v14  ;;  %vm1870_vm11 = vcmp.ne.s32.totalorder %v3522_v55, 0  ;;  %v1276_v20 = vsel %vm1268_vm12, 1, %v3006_v14 }
 0x502   : > { %v1882_v2 = vsel %vm1874_vm0, 1, %v3006_v14  ;;  %v1283_v10 = vrot.slane %v1272_v1, %v3231_v42  ;;  %v1287_v11 = vrot.slane %v1272_v1, %v3234_v43  ;;  %v1878_v12 = vsel %vm1870_vm11, 1, %v3006_v14 }
 0x503   : > { %v1921_v13 = vrot.slane %v1882_v2, %v3231_v42  ;;  %v1925_v15 = vrot.slane %v1882_v2, %v3234_v43  ;;  %v1889_v17 = vrot.slane %v1878_v12, %v3231_v42  ;;  %v1893_v18 = vrot.slane %v1878_v12, %v3234_v43 }
 0x504   : > { %vm1344_vm13 = vcmp.eq.s32.totalorder %v1283_v10, 1  ;;  %vm1345_vm1 = vcmp.eq.s32.totalorder %v1287_v11, 1  ;;  %vm1265_vm14 = vcmp.ne.s32.totalorder %v3529_v60, 0  ;;  %v1315_v33 = vrot.slane %v1276_v20, %v3231_v42 }
 0x505   : > { %vm1958_vm5 = vcmp.eq.s32.totalorder %v1921_v13, 1  ;;  %vm1959_vm15 = vcmp.eq.s32.totalorder %v1925_v15, 1  ;;  %v3548_v21 = vsel %vm1344_vm13, %v3437_v23, -1e+30  ;;  %v3551_v25 = vsel %vm1345_vm1, %v3439_v24, -1e+30 }
 0x506   : > { %v3554_v26 = vsel %vm1958_vm5, %v3437_v23, -1e+30  ;;  %v3557_v27 = vsel %vm1959_vm15, %v3439_v24, -1e+30  ;;  %v1376_v28 = vmax.f32 %v3548_v21, %v3551_v25  ;;  %vm1950_vm7 = vcmp.eq.s32.totalorder %v1889_v17, 1 }
 0x507   : > { %v1994_v19 = vmax.f32 %v3554_v26, %v3557_v27  ;;  %vm1951_vm0 = vcmp.eq.s32.totalorder %v1893_v18, 1  ;;  %v3564_v9 = vsel %vm1950_vm7, %v3437_v23, -1e+30  ;;  %v1273_v29 = vsel %vm1265_vm14, 1, %v3006_v14 }
 0x508   : > { %1377 = vmax.xlane.f32.xlu1 %v1376_v28  ;;  %v3568_v30 = vsel %vm1951_vm0, %v3439_v24, -1e+30  ;;  %v1291_v31 = vrot.slane %v1273_v29, %v3231_v42  ;;  %v1295_v32 = vrot.slane %v1273_v29, %v3234_v43  ;;  %v1319_v35 = vrot.slane %v1276_v20, %v3234_v43 }
 0x509   : > { %1995 = vmax.xlane.f32.xlu0 %v1994_v19  ;;  %v1982_v34 = vmax.f32 %v3564_v9, %v3568_v30  ;;  %v3577_v36 = vrot.slane %v1836_v59, %v3311_v16  ;;  %vm1266_vm11 = vcmp.ne.s32.totalorder %v1260_v61, 0  ;;  %vm1352_vm1 = vcmp.eq.s32.totalorder %v1315_v33, 1 }
 0x50a   : > { %vm1346_vm12 = vcmp.eq.s32.totalorder %v1291_v31, 1  ;;  %vm1347_vm13 = vcmp.eq.s32.totalorder %v1295_v32, 1  ;;  %v1274_v37 = vsel %vm1266_vm11, 1, %v3006_v14  ;;  %vm1353_vm14 = vcmp.eq.s32.totalorder %v1319_v35, 1 }
 0x50b   : > { %v3581_v63 = vsel %vm1346_vm12, %v3437_v23, -1e+30  ;;  %v3584_v3 = vsel %vm1347_vm13, %v3439_v24, -1e+30  ;;  %vm1871_vm5 = vcmp.ne.s32.totalorder %v3577_v36, 0  ;;  %v1299_v6 = vrot.slane %v1274_v37, %v3231_v42 }
 0x50c   : > { %1983 = vmax.xlane.f32.xlu1 %v1982_v34  ;;  %v1379_v40 = vmax.f32 %v3581_v63, %v3584_v3  ;;  %v3590_v41 = vsel %vm1352_vm1, %v3437_v23, -1e+30  ;;  %v3593_v4 = vsel %vm1353_vm14, %v3439_v24, -1e+30  ;;  %v1879_v46 = vsel %vm1871_vm5, 1, %v3006_v14 }
 0x50d   : > { %v1388_v49 = vmax.f32 %v3590_v41, %v3593_v4  ;;  %v1897_v50 = vrot.slane %v1879_v46, %v3231_v42  ;;  %v1901_v5 = vrot.slane %v1879_v46, %v3234_v43  ;;  %v1303_v0 = vrot.slane %v1274_v37, %v3234_v43 }
 0x50e   : > { %1380 = vmax.xlane.f32.xlu0 %v1379_v40  ;;  %v1866_v53 = vcombine.high %v3522_v55, %v3522_v55  ;;  %v3605_v8 = vrot.slane %v1231_v62, %v3311_v16  ;;  %v1837_v59 = vcombine.high %v3513_v7, %v3513_v7  ;;  %vm1348_vm0 = vcmp.eq.s32.totalorder %v1299_v6, 1 }
 0x50f   : > { %vm1952_vm15 = vcmp.eq.s32.totalorder %v1897_v50, 1  ;;  %vm1953_vm7 = vcmp.eq.s32.totalorder %v1901_v5, 1  ;;  %v1261_v61 = vcombine.high %v3526_v57, %v3526_v57  ;;  %vm1349_vm11 = vcmp.eq.s32.totalorder %v1303_v0, 1 }
 0x510   : > { %1389 = vmax.xlane.f32.xlu1 %v1388_v49  ;;  %v3612_v1 = vsel %vm1952_vm15, %v3437_v23, -1e+30  ;;  %v3615_v2 = vsel %vm1953_vm7, %v3439_v24, -1e+30  ;;  %vm1872_vm12 = vcmp.ne.s32.totalorder %v1866_v53, 0  ;;  %vm1269_vm13 = vcmp.ne.s32.totalorder %v3605_v8, 0 }
 0x511   : > { %v1985_v55 = vmax.f32 %v3612_v1, %v3615_v2  ;;  %v3620_v7 = vsel %vm1348_vm0, %v3437_v23, -1e+30  ;;  %v3623_v62 = vsel %vm1349_vm11, %v3439_v24, -1e+30  ;;  %v1880_v57 = vsel %vm1872_vm12, 1, %v3006_v14 }
 0x512   : > { %v1382_v10 = vmax.f32 %v3620_v7, %v3623_v62  ;;  %v1905_v11 = vrot.slane %v1880_v57, %v3231_v42  ;;  %v1909_v12 = vrot.slane %v1880_v57, %v3234_v43  ;;  %v1277_v13 = vsel %vm1269_vm13, 1, %v3006_v14 }
 0x513   : > { %1986 = vmax.xlane.f32.xlu0 %v1985_v55  ;;  %v1865_v15 = vrot.slane %v1837_v59, %v3311_v16  ;;  %vm1270_vm1 = vcmp.ne.s32.totalorder %v1261_v61, 0  ;;  %v1867_v17 = vcombine.high %v3519_v54, %v3519_v54  ;;  %v1323_v18 = vrot.slane %v1277_v13, %v3231_v42 }
 0x514   : > { %1383 = vmax.xlane.f32.xlu1 %v1382_v10  ;;  %vm1954_vm14 = vcmp.eq.s32.totalorder %v1905_v11, 1  ;;  %vm1955_vm5 = vcmp.eq.s32.totalorder %v1909_v12, 1  ;;  %v1327_v20 = vrot.slane %v1277_v13, %v3234_v43  ;;  %v1278_v29 = vsel %vm1270_vm1, 1, %v3006_v14 }
 0x515   : > { %v3638_v28 = vsel %vm1954_vm14, %v3437_v23, -1e+30  ;;  %v3641_v19 = vsel %vm1955_vm5, %v3439_v24, -1e+30  ;;  %vm1875_vm15 = vcmp.ne.s32.totalorder %v1865_v15, 0  ;;  %vm1354_vm7 = vcmp.eq.s32.totalorder %v1323_v18, 1 }
 0x516   : > { %v1988_v31 = vmax.f32 %v3638_v28, %v3641_v19  ;;  %vm1355_vm0 = vcmp.eq.s32.totalorder %v1327_v20, 1  ;;  %v1883_v54 = vsel %vm1875_vm15, 1, %v3006_v14  ;;  %v3648_v32 = vsel %vm1354_vm7, %v3437_v23, -1e+30 }
 0x517   : > { %v3651_v33 = vsel %vm1355_vm0, %v3439_v24, -1e+30  ;;  %v1929_v34 = vrot.slane %v1883_v54, %v3231_v42  ;;  %v1933_v35 = vrot.slane %v1883_v54, %v3234_v43  ;;  %v1331_v40 = vrot.slane %v1278_v29, %v3231_v42 }
 0x518   : > { %1989 = vmax.xlane.f32.xlu0 %v1988_v31  ;;  %v1391_v37 = vmax.f32 %v3648_v32, %v3651_v33  ;;  %v1335_v46 = vrot.slane %v1278_v29, %v3234_v43  ;;  %vm1876_vm11 = vcmp.ne.s32.totalorder %v1867_v17, 0  ;;  %v1868_v50 = vcombine.high %v3577_v36, %v3577_v36 }
 0x519   : > { %vm1960_vm12 = vcmp.eq.s32.totalorder %v1929_v34, 1  ;;  %vm1961_vm13 = vcmp.eq.s32.totalorder %v1933_v35, 1  ;;  %v1884_v49 = vsel %vm1876_vm11, 1, %v3006_v14  ;;  %vm1356_vm1 = vcmp.eq.s32.totalorder %v1331_v40, 1 }
 0x51a   : > { %1392 = vmax.xlane.f32.xlu1 %v1391_v37  ;;  %v3663_v5 = vsel %vm1960_vm12, %v3437_v23, -1e+30  ;;  %v3666_v6 = vsel %vm1961_vm13, %v3439_v24, -1e+30  ;;  %vm1357_vm14 = vcmp.eq.s32.totalorder %v1335_v46, 1  ;;  %v1937_v36 = vrot.slane %v1884_v49, %v3231_v42 }
 0x51b   : > { %v1997_v0 = vmax.f32 %v3663_v5, %v3666_v6  ;;  %v3671_v53 = vsel %vm1356_vm1, %v3437_v23, -1e+30  ;;  %v3674_v59 = vsel %vm1357_vm14, %v3439_v24, -1e+30  ;;  %v1941_v55 = vrot.slane %v1884_v49, %v3234_v43 }
 0x51c   : > { %v1394_v61 = vmax.f32 %v3671_v53, %v3674_v59  ;;  %vm1873_vm5 = vcmp.ne.s32.totalorder %v1868_v50, 0  ;;  %v1262_v57 = vcombine.high %v3529_v60, %v3529_v60  ;;  %vm1962_vm15 = vcmp.eq.s32.totalorder %v1937_v36, 1 }
 0x51d   : > { %1998 = vmax.xlane.f32.xlu0 %v1997_v0  ;;  %v1881_v10 = vsel %vm1873_vm5, 1, %v3006_v14  ;;  %v1869_v11 = vcombine.high %v1865_v15, %v1865_v15  ;;  %v1263_v12 = vcombine.high %v3605_v8, %v3605_v8  ;;  %vm1963_vm7 = vcmp.eq.s32.totalorder %v1941_v55, 1 }
 0x51e   : > { %1395 = vmax.xlane.f32.xlu1 %v1394_v61  ;;  %v3686_v13 = vsel %vm1962_vm15, %v3437_v23, -1e+30  ;;  %v1913_v17 = vrot.slane %v1881_v10, %v3231_v42  ;;  %v1917_v18 = vrot.slane %v1881_v10, %v3234_v43  ;;  %v3691_v20 = vsel %vm1963_vm7, %v3439_v24, -1e+30 }
 0x51f   : > { %vm1267_vm0 = vcmp.ne.s32.totalorder %v1262_v57, 0  ;;  %vm1877_vm11 = vcmp.ne.s32.totalorder %v1869_v11, 0  ;;  %vm1271_vm12 = vcmp.ne.s32.totalorder %v1263_v12, 0  ;;  %v2000_v60 = vmax.f32 %v3686_v13, %v3691_v20 }
 0x520   : > { %vm1956_vm13 = vcmp.eq.s32.totalorder %v1913_v17, 1  ;;  %vm1957_vm1 = vcmp.eq.s32.totalorder %v1917_v18, 1  ;;  %v1275_v8 = vsel %vm1267_vm0, 1, %v3006_v14  ;;  %v1885_v35 = vsel %vm1877_vm11, 1, %v3006_v14 }
 0x521   : > { %v3697_v15 = vsel %vm1956_vm13, %v3437_v23, -1e+30  ;;  %v3700_v29 = vsel %vm1957_vm1, %v3439_v24, -1e+30  ;;  %v1307_v31 = vrot.slane %v1275_v8, %v3231_v42  ;;  %v1311_v54 = vrot.slane %v1275_v8, %v3234_v43  ;;  %2001 = vmax.xlane.f32.xlu0 %v2000_v60 }
 0x522   : > { %v1991_v34 = vmax.f32 %v3697_v15, %v3700_v29  ;;  %v1279_v37 = vsel %vm1271_vm12, 1, %v3006_v14  ;;  %v1945_v40 = vrot.slane %v1885_v35, %v3231_v42  ;;  %v1949_v46 = vrot.slane %v1885_v35, %v3234_v43 }
 0x523   : > { %vm1350_vm14 = vcmp.eq.s32.totalorder %v1307_v31, 1  ;;  %vm1351_vm5 = vcmp.eq.s32.totalorder %v1311_v54, 1  ;;  %v1339_v0 = vrot.slane %v1279_v37, %v3231_v42  ;;  %v1343_v36 = vrot.slane %v1279_v37, %v3234_v43 }
 0x524   : > { %v3711_v49 = vsel %vm1350_vm14, %v3437_v23, -1e+30  ;;  %v3714_v50 = vsel %vm1351_vm5, %v3439_v24, -1e+30  ;;  %vm1964_vm15 = vcmp.eq.s32.totalorder %v1945_v40, 1  ;;  %vm1965_vm7 = vcmp.eq.s32.totalorder %v1949_v46, 1 }
 0x525   : > { %v1385_v61 = vmax.f32 %v3711_v49, %v3714_v50  ;;  %1992 = vmax.xlane.f32.xlu0 %v1991_v34  ;;  %v3721_v14 = vsel %vm1964_vm15, %v3437_v23, -1e+30  ;;  %v3724_v55 = vsel %vm1965_vm7, %v3439_v24, -1e+30  ;;  %vm1358_vm0 = vcmp.eq.s32.totalorder %v1339_v0, 1 }
 0x526   : > { %vm1359_vm11 = vcmp.eq.s32.totalorder %v1343_v36, 1  ;;  %v3727_v57 = vsel %vm1358_vm0, %v3437_v23, -1e+30  ;;  %v2003_v11 = vmax.f32 %v3721_v14, %v3724_v55  ;;  %v1458_v17 = vrot.slane %v1450_v44, %v3311_v16 }
 0x527   : > { %1386 = vmax.xlane.f32.xlu1 %v1385_v61  ;;  %v3730_v10 = vsel %vm1359_vm11, %v3439_v24, -1e+30  ;;  %v3744_v23 = vrot.slane %v2057_v52, %v3311_v16  ;;  %v3759_v52 = vrot.slane %v1451_v45, %v3311_v16  ;;  %v2064_v34 = vrot.slane %v2056_v51, %v3311_v16 }
 0x528   : > { %v1397_v12 = vmax.f32 %v3727_v57, %v3730_v10  ;;  %v3751_v18 = vrot.slane %v1458_v17, %v3311_v16  ;;  %v1466_v8 = vcombine.high %v1458_v17, %v1458_v17 }
 0x529   : > { %2004 = vmax.xlane.f32.xlu0 %v2003_v11  ;;  %v3748_v24 = vrot.slane %v3744_v23, %v3311_v16  ;;  %v3781_v36 = vrot.slane %v2064_v34, %v3311_v16  ;;  %v2072_v61 = vcombine.high %v2064_v34, %v2064_v34  ;;  %v3785_v11 = vrot.slane %v3759_v52, %v3311_v16 }
 0x52a   : > { %v1503_v38 = vrot.slane %v3751_v18, %v3231_v42  ;;  %v3774_v58 = vrot.slane %v1466_v8, %v3311_v16 }
 0x52b   : > { %1398 = vmax.xlane.f32.xlu1 %v1397_v12 }
 0x52c   : > { %v1511_v8 = vrot.slane %v3774_v58, %v3231_v42 }
 0x591   : > { %v1378_v60 = vpop.xlane.xlu1 %1377 }
 0x592   : > { %v1996_v31 = vpop.xlane.xlu0 %1995  ;;  %v1400_v54 = vsub.f32 %v3548_v21, %v1378_v60  ;;  %v1401_v44 = vsub.f32 %v3551_v25, %v1378_v60  ;;  %v2141_v21 = vrot.slane %v3748_v24, %v3231_v42  ;;  %v2145_v25 = vrot.slane %v3748_v24, %v3234_v43 }
 0x593   : > { %v2014_v35 = vsub.f32 %v3554_v26, %v1996_v31  ;;  %v2015_v37 = vsub.f32 %v3557_v27, %v1996_v31  ;;  %v1507_v26 = vrot.slane %v3751_v18, %v3234_v43  ;;  %v3793_v31 = vcombine.high %v3751_v18, %v3751_v18 }
 0x594   : > { %v1416_v40 = vmul.f32 1.442695, %v1400_v54  ;;  %v1418_v46 = vmul.f32 1.442695, %v1401_v44 }
 0x595   : > { %v2038_v39 = vmul.f32 1.442695, %v2014_v35  ;;  %v2040_v45 = vmul.f32 1.442695, %v2015_v37  ;;  %v1984_v0 = vpop.xlane.xlu1 %1983 }
 0x596   : > { %2742 = vpow2.f32 %v1416_v40  ;;  %v2006_v47 = vsub.f32 %v3564_v9, %v1984_v0  ;;  %v2007_v51 = vsub.f32 %v3568_v30, %v1984_v0  ;;  %v2109_v0 = vrot.slane %v3781_v36, %v3231_v42 }
 0x597   : > { %2744 = vpow2.f32 %v2038_v39  ;;  %v1381_v27 = vpop.xlane.xlu0 %1380 }
 0x598   : > { %2746 = vpow2.f32 %v2040_v45  ;;  %v2022_v12 = vmul.f32 1.442695, %v2006_v47  ;;  %v2024_v17 = vmul.f32 1.442695, %v2007_v51  ;;  %v1402_v9 = vsub.f32 %v3581_v63, %v1381_v27 }
 0x599   : > { %2748 = vpow2.f32 %v1418_v46  ;;  %v1403_v30 = vsub.f32 %v3584_v3, %v1381_v27  ;;  %v1390_v60 = vpop.xlane.xlu1 %1389  ;;  %v1515_v63 = vrot.slane %v3774_v58, %v3234_v43  ;;  %v2073_v3 = vcombine.high %v3744_v23, %v3744_v23 }
 0x59a   : > { %2750 = vpow2.f32 %v2022_v12  ;;  %v1420_v54 = vmul.f32 1.442695, %v1402_v9  ;;  %v1408_v44 = vsub.f32 %v3590_v41, %v1390_v60  ;;  %v1409_v34 = vsub.f32 %v3593_v4, %v1390_v60 }
 0x59b   : > { %2752 = vpow2.f32 %v2024_v17  ;;  %v1422_v35 = vmul.f32 1.442695, %v1403_v30  ;;  %v1467_v45 = vcombine.high %v3759_v52, %v3759_v52  ;;  %v3810_v51 = vrot.slane %v2072_v61, %v3311_v16 }
 0x59c   : > { %2754 = vpow2.f32 %v1420_v54  ;;  %v1432_v37 = vmul.f32 1.442695, %v1408_v44  ;;  %v1434_v40 = vmul.f32 1.442695, %v1409_v34  ;;  %v1987_v39 = vpop.xlane.xlu0 %1986  ;;  %v1535_v17 = vrot.slane %v3785_v11, %v3231_v42 }
 0x59d   : > { %2756 = vpow2.f32 %v1422_v35  ;;  %v2008_v41 = vsub.f32 %v3612_v1, %v1987_v39  ;;  %v2009_v4 = vsub.f32 %v3615_v2, %v1987_v39  ;;  %v1384_v46 = vpop.xlane.xlu1 %1383  ;;  %v2113_v1 = vrot.slane %v3781_v36, %v3234_v43 }
 0x59e   : > { %2758 = vpow2.f32 %v1432_v37  ;;  %v1404_v47 = vsub.f32 %v3620_v7, %v1384_v46  ;;  %v1405_v23 = vsub.f32 %v3623_v62, %v1384_v46  ;;  %v1539_v9 = vrot.slane %v3785_v11, %v3234_v43 }
 0x59f   : > { %2760 = vpow2.f32 %v1434_v40  ;;  %v2026_v27 = vmul.f32 1.442695, %v2008_v41  ;;  %v2028_v52 = vmul.f32 1.442695, %v2009_v4  ;;  %v3820_v62 = vcombine.high %v3781_v36, %v3781_v36 }
 0x5a0   : > { %v1424_v12 = vmul.f32 1.442695, %v1404_v47  ;;  %v1426_v2 = vmul.f32 1.442695, %v1405_v23  ;;  %v1519_v61 = vrot.slane %v3793_v31, %v3231_v42  ;;  %v1523_v30 = vrot.slane %v3793_v31, %v3234_v43 }
 0x5a1   : > { %2762 = vpow2.f32 %v2026_v27  ;;  %v1990_v7 = vpop.xlane.xlu0 %1989  ;;  %v2117_v44 = vrot.slane %v3810_v51, %v3231_v42  ;;  %v2121_v37 = vrot.slane %v3810_v51, %v3234_v43  ;;  %v3833_v40 = vrot.slane %v2073_v3, %v3311_v16 }
 0x5a2   : > { %2764 = vpow2.f32 %v2028_v52  ;;  %v2010_v60 = vsub.f32 %v3638_v28, %v1990_v7  ;;  %v2011_v54 = vsub.f32 %v3641_v19, %v1990_v7  ;;  %v3836_v39 = vrot.slane %v1467_v45, %v3311_v16 }
 0x5a3   : > { %v2743_v34 = vpop.eup %2742  ;;  %2766 = vpow2.f32 %v1424_v12  ;;  %v1393_v35 = vpop.xlane.xlu1 %1392  ;;  %v2125_v3 = vrot.slane %v3820_v62, %v3231_v42  ;;  %v2129_v16 = vrot.slane %v3820_v62, %v3234_v43  ;;  %v2153_v62 = vrot.slane %v3833_v40, %v3234_v43 }
 0x5a4   : > { %v2745_v41 = vpop.eup %2744  ;;  %2768 = vpow2.f32 %v1426_v2  ;;  %v2030_v28 = vmul.f32 1.442695, %v2010_v60  ;;  %v2032_v4 = vmul.f32 1.442695, %v2011_v54  ;;  %v1410_v19 = vsub.f32 %v3648_v32, %v1393_v35 }
 0x5a5   : > { %v2747_v46 = vpop.eup %2746  ;;  %v1411_v47 = vsub.f32 %v3651_v33, %v1393_v35  ;;  %v3843_v23 = vmul.f32 %v2745_v41, %v2141_v21  ;;  %v3857_v33 = vmul.f32 %v2743_v34, %v1503_v38 }
 0x5a6   : > { %v2749_v45 = vpop.eup %2748  ;;  %2770 = vpow2.f32 %v2030_v28  ;;  %v1436_v27 = vmul.f32 1.442695, %v1410_v19  ;;  %v1999_v52 = vpop.xlane.xlu0 %1998  ;;  %v3852_v32 = vmul.f32 %v2747_v46, %v2145_v25 }
 0x5a7   : > { %v2751_v21 = vpop.eup %2750  ;;  %2772 = vpow2.f32 %v2032_v4  ;;  %v1438_v12 = vmul.f32 1.442695, %v1411_v47  ;;  %v2016_v2 = vsub.f32 %v3663_v5, %v1999_v52  ;;  %v2017_v7 = vsub.f32 %v3666_v6, %v1999_v52  ;;  %v1396_v60 = vpop.xlane.xlu1 %1395 }
 0x5a8   : > { %v2753_v54 = vpop.eup %2752  ;;  %2774 = vpow2.f32 %v1436_v27  ;;  %v1412_v35 = vsub.f32 %v3671_v53, %v1396_v60  ;;  %v1413_v25 = vsub.f32 %v3674_v59, %v1396_v60  ;;  %v2214_v41 = vadd.f32 %v3852_v32, %v3843_v23 }
 0x5a9   : > { %v2755_v28 = vpop.eup %2754  ;;  %2776 = vpow2.f32 %v1438_v12  ;;  %v2042_v38 = vmul.f32 1.442695, %v2016_v2  ;;  %v2044_v34 = vmul.f32 1.442695, %v2017_v7  ;;  %v3868_v5 = vmul.f32 %v2749_v45, %v1507_v26 }
 0x5aa   : > { %v2757_v6 = vpop.eup %2756  ;;  %v1440_v4 = vmul.f32 1.442695, %v1412_v35  ;;  %v1442_v19 = vmul.f32 1.442695, %v1413_v25  ;;  %2215 = vadd.xlane.f32.xlu0 %v2214_v41  ;;  %v3873_v53 = vmul.f32 %v2755_v28, %v1511_v8  ;;  %v3878_v59 = vmul.f32 %v2751_v21, %v2109_v0  ;;  %v2002_v47 = vpop.xlane.xlu0 %2001 }
 0x5ab   : > { %v2759_v46 = vpop.eup %2758  ;;  %2778 = vpow2.f32 %v2042_v38  ;;  %v1596_v18 = vadd.f32 %v3868_v5, %v3857_v33  ;;  %v3885_v26 = vmul.f32 %v2757_v6, %v1515_v63  ;;  %v3890_v8 = vmul.f32 %v2753_v54, %v2113_v1 }
 0x5ac   : > { %v2761_v45 = vpop.eup %2760  ;;  %2780 = vpow2.f32 %v2044_v34  ;;  %v2018_v0 = vsub.f32 %v3686_v13, %v2002_v47  ;;  %v2019_v27 = vsub.f32 %v3691_v20, %v2002_v47  ;;  %v3897_v52 = vmul.f32 %v2759_v46, %v1535_v17 }
 0x5ad   : > { %2782 = vpow2.f32 %v1440_v4  ;;  %1597 = vadd.xlane.f32.xlu1 %v1596_v18  ;;  %v1599_v63 = vadd.f32 %v3885_v26, %v3873_v53  ;;  %v2202_v36 = vadd.f32 %v3890_v8, %v3878_v59  ;;  %v3906_v1 = vmul.f32 %v2761_v45, %v1539_v9 }
 0x5ae   : > { %v2763_v13 = vpop.eup %2762  ;;  %2784 = vpow2.f32 %v1442_v19  ;;  %v2046_v20 = vmul.f32 1.442695, %v2018_v0  ;;  %v2048_v21 = vmul.f32 1.442695, %v2019_v27  ;;  %v3910_v17 = vcombine.high %v3748_v24, %v3748_v24  ;;  %v1993_v2 = vpop.xlane.xlu0 %1992 }
 0x5af   : > { %v2765_v12 = vpop.eup %2764  ;;  %1600 = vadd.xlane.f32.xlu0 %v1599_v63  ;;  %v3915_v7 = vmul.f32 %v2763_v13, %v2117_v44  ;;  %v1608_v9 = vadd.f32 %v3906_v1, %v3897_v52  ;;  %v2149_v60 = vrot.slane %v3833_v40, %v3231_v42  ;;  %v3923_v54 = vcombine.high %v3785_v11, %v3785_v11 }
 0x5b0   : > { %v2767_v24 = vpop.eup %2766  ;;  %2786 = vpow2.f32 %v2046_v20  ;;  %v2012_v35 = vsub.f32 %v3697_v15, %v1993_v2  ;;  %v2013_v25 = vsub.f32 %v3700_v29, %v1993_v2  ;;  %v1387_v41 = vpop.xlane.xlu1 %1386  ;;  %v3930_v44 = vmul.f32 %v2765_v12, %v2121_v37 }
 0x5b1   : > { %v2769_v28 = vpop.eup %2768  ;;  %2788 = vpow2.f32 %v2048_v21  ;;  %v1406_v38 = vsub.f32 %v3711_v49, %v1387_v41  ;;  %v1407_v34 = vsub.f32 %v3714_v50, %v1387_v41  ;;  %2203 = vadd.xlane.f32.xlu1 %v2202_v36  ;;  %v3937_v11 = vmul.f32 %v2767_v24, %v1519_v61 }
 0x5b2   : > { %v2034_v15 = vmul.f32 1.442695, %v2012_v35  ;;  %v2036_v29 = vmul.f32 1.442695, %v2013_v25  ;;  %v2205_v6 = vadd.f32 %v3930_v44, %v3915_v7  ;;  %v3944_v37 = vmul.f32 %v2769_v28, %v1523_v30  ;;  %v2005_v50 = vpop.xlane.xlu0 %2004 }
 0x5b3   : > { %v2771_v4 = vpop.eup %2770  ;;  %v1428_v49 = vmul.f32 1.442695, %v1406_v38  ;;  %v1430_v19 = vmul.f32 1.442695, %v1407_v34  ;;  %v1543_v46 = vrot.slane %v3836_v39, %v3231_v42  ;;  %v1547_v61 = vrot.slane %v3836_v39, %v3234_v43 }
 0x5b4   : > { %v2773_v47 = vpop.eup %2772  ;;  %2790 = vpow2.f32 %v2034_v15  ;;  %v2020_v18 = vsub.f32 %v3721_v14, %v2005_v50  ;;  %v2021_v45 = vsub.f32 %v3724_v55, %v2005_v50  ;;  %v1399_v0 = vpop.xlane.xlu1 %1398  ;;  %2206 = vadd.xlane.f32.xlu0 %v2205_v6  ;;  %v3955_v31 = vmul.f32 %v2771_v4, %v2125_v3 }
 0x5b5   : > { %v2775_v30 = vpop.eup %2774  ;;  %2792 = vpow2.f32 %v2036_v29  ;;  %v1414_v27 = vsub.f32 %v3727_v57, %v1399_v0  ;;  %v1415_v63 = vsub.f32 %v3730_v10, %v1399_v0  ;;  %1609 = vadd.xlane.f32.xlu1 %v1608_v9  ;;  %v3962_v14 = vmul.f32 %v2773_v47, %v2129_v16 }
 0x5b6   : > { %v2777_v55 = vpop.eup %2776  ;;  %2794 = vpow2.f32 %v1428_v49  ;;  %v2050_v36 = vmul.f32 1.442695, %v2020_v18  ;;  %v2052_v13 = vmul.f32 1.442695, %v2021_v45  ;;  %v1602_v3 = vadd.f32 %v3944_v37, %v3937_v11 }
 0x5b7   : > { %2796 = vpow2.f32 %v1430_v19  ;;  %v1444_v20 = vmul.f32 1.442695, %v1414_v27  ;;  %v1446_v21 = vmul.f32 1.442695, %v1415_v63  ;;  %v2208_v57 = vadd.f32 %v3962_v14, %v3955_v31 }
 0x5b8   : > { %v2779_v10 = vpop.eup %2778  ;;  %2798 = vpow2.f32 %v2050_v36  ;;  %v3970_v16 = vmul.f32 %v2775_v30, %v1543_v46  ;;  %v3972_v12 = vmul.f32 %v2777_v55, %v1547_v61  ;;  %v1551_v24 = vrot.slane %v3923_v54, %v3231_v42 }
 0x5b9   : > { %v2781_v2 = vpop.eup %2780  ;;  %2800 = vpow2.f32 %v2052_v13  ;;  %2209 = vadd.xlane.f32.xlu0 %v2208_v57  ;;  %1603 = vadd.xlane.f32.xlu1 %v1602_v3  ;;  %v3974_v9 = vmul.f32 %v2779_v10, %v2149_v60  ;;  %v1555_v28 = vrot.slane %v3923_v54, %v3234_v43  ;;  %v2157_v15 = vrot.slane %v3910_v17, %v3231_v42 }
 0x5ba   : > { %v2783_v35 = vpop.eup %2782  ;;  %2802 = vpow2.f32 %v1444_v20  ;;  %v3978_v25 = vmul.f32 %v2781_v2, %v2153_v62  ;;  %v1611_v41 = vadd.f32 %v3972_v12, %v3970_v16  ;;  %v2104_v6 = vcombine.high %v3810_v51, %v3810_v51 }
 0x5bb   : > { %v2785_v38 = vpop.eup %2784  ;;  %2804 = vpow2.f32 %v1446_v21  ;;  %v3984_v34 = vmul.f32 %v2783_v35, %v1551_v24  ;;  %v2161_v54 = vrot.slane %v3910_v17, %v3234_v43  ;;  %v1498_v46 = vcombine.high %v3774_v58, %v3774_v58 }
 0x5bc   : > { %v2217_v60 = vadd.f32 %v3978_v25, %v3974_v9  ;;  %v3990_v29 = vmul.f32 %v2785_v38, %v1555_v28  ;;  %v2133_v47 = vrot.slane %v2104_v6, %v3231_v42  ;;  %v2105_v51 = vcombine.high %v3833_v40, %v3833_v40 }
 0x5bd   : > { %v2787_v4 = vpop.eup %2786  ;;  %1612 = vadd.xlane.f32.xlu1 %v1611_v41  ;;  %v2137_v45 = vrot.slane %v2104_v6, %v3234_v43  ;;  %v1527_v27 = vrot.slane %v1498_v46, %v3231_v42  ;;  %v1499_v58 = vcombine.high %v3836_v39, %v3836_v39  ;;  %v1531_v40 = vrot.slane %v1498_v46, %v3234_v43 }
 0x5be   : > { %v2789_v49 = vpop.eup %2788  ;;  %2218 = vadd.xlane.f32.xlu0 %v2217_v60  ;;  %v3996_v19 = vmul.f32 %v2787_v4, %v2157_v15  ;;  %v1614_v50 = vadd.f32 %v3990_v29, %v3984_v34  ;;  %v2165_v3 = vrot.slane %v2105_v51, %v3231_v42  ;;  %v2169_v10 = vrot.slane %v2105_v51, %v3234_v43 }
 0x5bf   : > { %v4002_v61 = vmul.f32 %v2789_v49, %v2161_v54  ;;  %v1559_v2 = vrot.slane %v1499_v58, %v3231_v42  ;;  %v1563_v28 = vrot.slane %v1499_v58, %v3234_v43 }
 0x5c1   : > { %v2791_v18 = vpop.eup %2790  ;;  %v2220_v17 = vadd.f32 %v4002_v61, %v3996_v19  ;;  %1615 = vadd.xlane.f32.xlu1 %v1614_v50 }
 0x5c2   : > { %v2793_v0 = vpop.eup %2792  ;;  %v4010_v30 = vmul.f32 %v2791_v18, %v2133_v47 }
 0x5c3   : > { %v2795_v63 = vpop.eup %2794  ;;  %2221 = vadd.xlane.f32.xlu0 %v2220_v17  ;;  %v4015_v55 = vmul.f32 %v2793_v0, %v2137_v45 }
 0x5c4   : > { %v2797_v36 = vpop.eup %2796  ;;  %v4018_v13 = vmul.f32 %v2795_v63, %v1527_v27 }
 0x5c5   : > { %v2799_v20 = vpop.eup %2798  ;;  %v2211_v21 = vadd.f32 %v4015_v55, %v4010_v30  ;;  %v4023_v57 = vmul.f32 %v2797_v36, %v1531_v40 }
 0x5c6   : > { %v2801_v39 = vpop.eup %2800  ;;  %v4026_v62 = vmul.f32 %v2799_v20, %v2165_v3 }
 0x5c7   : > { %v2803_v24 = vpop.eup %2802  ;;  %2212 = vadd.xlane.f32.xlu0 %v2211_v21  ;;  %v1605_v35 = vadd.f32 %v4023_v57, %v4018_v13  ;;  %v4031_v41 = vmul.f32 %v2801_v39, %v2169_v10 }
 0x5c8   : > { %v2805_v38 = vpop.eup %2804  ;;  %v4034_v60 = vmul.f32 %v2803_v24, %v1559_v2 }
 0x5c9   : > { %1606 = vadd.xlane.f32.xlu1 %v1605_v35  ;;  %v2223_v15 = vadd.f32 %v4031_v41, %v4026_v62  ;;  %v4038_v6 = vmul.f32 %v2805_v38, %v1563_v28 }
 0x5cb   : > { %2224 = vadd.xlane.f32.xlu0 %v2223_v15  ;;  %v1617_v42 = vadd.f32 %v4038_v6, %v4034_v60 }
 0x5cd   : > { %1618 = vadd.xlane.f32.xlu1 %v1617_v42 }
 0x633   : > { %v2216_v4 = vpop.xlane.xlu0 %2215 }
 0x634   : > { %v2230_v54 = vmax.f32 %v2216_v4, 1e-30 }
 0x636   : > { %2806 = vrcp.f32 %v2230_v54  ;;  %v1598_v49 = vpop.xlane.xlu1 %1597 }
 0x637   : > { %v1620_v50 = vmax.f32 %v1598_v49, 1e-30 }
 0x638   : > { %v1601_v43 = vpop.xlane.xlu0 %1600 }
 0x639   : > { %2808 = vrcp.f32 %v1620_v50  ;;  %v1621_v46 = vmax.f32 %v1601_v43, 1e-30 }
 0x63a   : > { %v2204_v47 = vpop.xlane.xlu1 %2203 }
 0x63b   : > { %2810 = vrcp.f32 %v1621_v46  ;;  %v2226_v51 = vmax.f32 %v2204_v47, 1e-30 }
 0x63d   : > { %2812 = vrcp.f32 %v2226_v51  ;;  %v2207_v18 = vpop.xlane.xlu0 %2206 }
 0x63e   : > { %v2227_v17 = vmax.f32 %v2207_v18, 1e-30  ;;  %v1610_v45 = vpop.xlane.xlu1 %1609 }
 0x63f   : > { %v1624_v0 = vmax.f32 %v1610_v45, 1e-30 }
 0x640   : > { %2814 = vrcp.f32 %v2227_v17 }
 0x641   : > { %2816 = vrcp.f32 %v1624_v0 }
 0x642   : > { %v2210_v27 = vpop.xlane.xlu0 %2209  ;;  %v1604_v58 = vpop.xlane.xlu1 %1603 }
 0x643   : > { %v2807_v63 = vpop.eup %2806  ;;  %v2228_v40 = vmax.f32 %v2210_v27, 1e-30  ;;  %v1622_v36 = vmax.f32 %v1604_v58, 1e-30 }
 0x644   : > { %v2250_v3 = vmul.f32 %v2807_v63, %v3843_v23  ;;  %v2251_v20 = vmul.f32 %v2807_v63, %v3852_v32 }
 0x645   : > { %2818 = vrcp.f32 %v2228_v40 }
 0x646   : > { %v2809_v21 = vpop.eup %2808  ;;  %2820 = vrcp.f32 %v1622_v36  ;;  %v1613_v10 = vpop.xlane.xlu1 %1612  ;;  %v2266_v39 = vmul.f32 %v2250_v3, %v3329_v48  ;;  %v2267_v2 = vmul.f32 %v2251_v20, %v3349_v56 }
 0x647   : > { %v2219_v24 = vpop.xlane.xlu0 %2218  ;;  %v1625_v35 = vmax.f32 %v1613_v10, 1e-30  ;;  %v1636_v28 = vmul.f32 %v2809_v21, %v3857_v33  ;;  %v1637_v38 = vmul.f32 %v2809_v21, %v3868_v5 }
 0x648   : > { %v2811_v15 = vpop.eup %2810  ;;  %v2231_v42 = vmax.f32 %v2219_v24, 1e-30  ;;  %v2286_v4 = vadd.f32 %v2267_v2, %v2266_v39 }
 0x649   : > { %2822 = vrcp.f32 %v1625_v35  ;;  %v1652_v23 = vmul.f32 %v1636_v28, %v3329_v48  ;;  %v1653_v32 = vmul.f32 %v1637_v38, %v3349_v56  ;;  %v1638_v54 = vmul.f32 %v2811_v15, %v3873_v53 }
 0x64a   : > { %v2813_v49 = vpop.eup %2812  ;;  %2824 = vrcp.f32 %v2231_v42  ;;  %v1616_v50 = vpop.xlane.xlu1 %1615  ;;  %2287 = vadd.xlane.f32.xlu0 %v2286_v4  ;;  %v1639_v43 = vmul.f32 %v2811_v15, %v3885_v26 }
 0x64b   : > { %v1626_v46 = vmax.f32 %v1616_v50, 1e-30  ;;  %v1668_v33 = vadd.f32 %v1653_v32, %v1652_v23  ;;  %v1654_v5 = vmul.f32 %v1638_v54, %v3329_v48  ;;  %v2242_v47 = vmul.f32 %v2813_v49, %v3878_v59 }
 0x64c   : > { %v2222_v51 = vpop.xlane.xlu0 %2221  ;;  %v1655_v18 = vmul.f32 %v1639_v43, %v3349_v56  ;;  %v2243_v17 = vmul.f32 %v2813_v49, %v3890_v8 }
 0x64d   : > { %v2815_v45 = vpop.eup %2814  ;;  %v2232_v0 = vmax.f32 %v2222_v51, 1e-30  ;;  %2826 = vrcp.f32 %v1626_v46  ;;  %1669 = vadd.xlane.f32.xlu1 %v1668_v33  ;;  %v2258_v53 = vmul.f32 %v2242_v47, %v3329_v48 }
 0x64e   : > { %v2817_v27 = vpop.eup %2816  ;;  %v1671_v58 = vadd.f32 %v1655_v18, %v1654_v5  ;;  %v2259_v26 = vmul.f32 %v2243_v17, %v3349_v56  ;;  %v2244_v63 = vmul.f32 %v2815_v45, %v3915_v7  ;;  %v2245_v40 = vmul.f32 %v2815_v45, %v3930_v44 }
 0x64f   : > { %2828 = vrcp.f32 %v2232_v0  ;;  %v1644_v59 = vmul.f32 %v2817_v27, %v3897_v52  ;;  %v1645_v36 = vmul.f32 %v2817_v27, %v3906_v1 }
 0x650   : > { %v2213_v8 = vpop.xlane.xlu0 %2212  ;;  %1672 = vadd.xlane.f32.xlu0 %v1671_v58  ;;  %v2274_v3 = vadd.f32 %v2259_v26, %v2258_v53  ;;  %v2260_v20 = vmul.f32 %v2244_v63, %v3329_v48  ;;  %v2261_v21 = vmul.f32 %v2245_v40, %v3349_v56 }
 0x651   : > { %v2229_v10 = vmax.f32 %v2213_v8, 1e-30  ;;  %v1660_v39 = vmul.f32 %v1644_v59, %v3329_v48  ;;  %v1661_v2 = vmul.f32 %v1645_v36, %v3349_v56 }
 0x652   : > { %v2819_v7 = vpop.eup %2818  ;;  %v1607_v24 = vpop.xlane.xlu1 %1606  ;;  %2275 = vadd.xlane.f32.xlu1 %v2274_v3  ;;  %v2277_v44 = vadd.f32 %v2261_v21, %v2260_v20 }
 0x653   : > { %v2821_v35 = vpop.eup %2820  ;;  %2830 = vrcp.f32 %v2229_v10  ;;  %v1623_v52 = vmax.f32 %v1607_v24, 1e-30  ;;  %v1680_v1 = vadd.f32 %v1661_v2, %v1660_v39  ;;  %v2246_v28 = vmul.f32 %v2819_v7, %v3955_v31 }
 0x654   : > { %v2225_v38 = vpop.xlane.xlu0 %2224  ;;  %2278 = vadd.xlane.f32.xlu0 %v2277_v44  ;;  %v2247_v15 = vmul.f32 %v2819_v7, %v3962_v14  ;;  %v1640_v42 = vmul.f32 %v2821_v35, %v3937_v11  ;;  %v1641_v4 = vmul.f32 %v2821_v35, %v3944_v37 }
 0x655   : > { %2832 = vrcp.f32 %v1623_v52  ;;  %v2233_v23 = vmax.f32 %v2225_v38, 1e-30  ;;  %v2262_v32 = vmul.f32 %v2246_v28, %v3329_v48 }
 0x656   : > { %v2823_v54 = vpop.eup %2822  ;;  %v1619_v49 = vpop.xlane.xlu1 %1618  ;;  %1681 = vadd.xlane.f32.xlu1 %v1680_v1  ;;  %v2263_v50 = vmul.f32 %v2247_v15, %v3349_v56  ;;  %v1656_v43 = vmul.f32 %v1640_v42, %v3329_v48  ;;  %v1657_v31 = vmul.f32 %v1641_v4, %v3349_v56 }
 0x657   : > { %v2825_v46 = vpop.eup %2824  ;;  %2834 = vrcp.f32 %v2233_v23  ;;  %v1627_v14 = vmax.f32 %v1619_v49, 1e-30  ;;  %v1646_v11 = vmul.f32 %v2823_v54, %v3970_v16  ;;  %v1647_v37 = vmul.f32 %v2823_v54, %v3972_v12 }
 0x658   : > { %v2280_v33 = vadd.f32 %v2263_v50, %v2262_v32  ;;  %v1674_v5 = vadd.f32 %v1657_v31, %v1656_v43  ;;  %v2252_v47 = vmul.f32 %v2825_v46, %v3974_v9  ;;  %v2253_v51 = vmul.f32 %v2825_v46, %v3978_v25 }
 0x659   : > { %2836 = vrcp.f32 %v1627_v14  ;;  %v1662_v18 = vmul.f32 %v1646_v11, %v3329_v48  ;;  %v1663_v17 = vmul.f32 %v1647_v37, %v3349_v56 }
 0x65a   : > { %v2827_v45 = vpop.eup %2826  ;;  %2281 = vadd.xlane.f32.xlu0 %v2280_v33  ;;  %1675 = vadd.xlane.f32.xlu1 %v1674_v5  ;;  %v2268_v0 = vmul.f32 %v2252_v47, %v3329_v48  ;;  %v2269_v16 = vmul.f32 %v2253_v51, %v3349_v56 }
 0x65b   : > { %v1683_v53 = vadd.f32 %v1663_v17, %v1662_v18  ;;  %v1648_v12 = vmul.f32 %v2827_v45, %v3984_v34  ;;  %v1649_v27 = vmul.f32 %v2827_v45, %v3990_v29 }
 0x65c   : > { %v2829_v9 = vpop.eup %2828  ;;  %v2289_v58 = vadd.f32 %v2269_v16, %v2268_v0 }
 0x65d   : > { %v2254_v25 = vmul.f32 %v2829_v9, %v3996_v19  ;;  %v2255_v26 = vmul.f32 %v2829_v9, %v4002_v61  ;;  %v1664_v63 = vmul.f32 %v1648_v12, %v3329_v48  ;;  %v1665_v40 = vmul.f32 %v1649_v27, %v3349_v56 }
 0x65e   : > { %2290 = vadd.xlane.f32.xlu0 %v2289_v58  ;;  %1684 = vadd.xlane.f32.xlu1 %v1683_v53 }
 0x65f   : > { %v2270_v59 = vmul.f32 %v2254_v25, %v3329_v48  ;;  %v2271_v36 = vmul.f32 %v2255_v26, %v3349_v56  ;;  %v1686_v8 = vadd.f32 %v1665_v40, %v1664_v63 }
 0x660   : > { %v2831_v34 = vpop.eup %2830 }
 0x661   : > { %v2292_v3 = vadd.f32 %v2271_v36, %v2270_v59  ;;  %v2248_v29 = vmul.f32 %v2831_v34, %v4010_v30  ;;  %v2249_v20 = vmul.f32 %v2831_v34, %v4015_v55 }
 0x662   : > { %v2833_v19 = vpop.eup %2832  ;;  %1687 = vadd.xlane.f32.xlu1 %v1686_v8 }
 0x663   : > { %2293 = vadd.xlane.f32.xlu0 %v2292_v3  ;;  %v2264_v61 = vmul.f32 %v2248_v29, %v3329_v48  ;;  %v2265_v21 = vmul.f32 %v2249_v20, %v3349_v56  ;;  %v1642_v10 = vmul.f32 %v2833_v19, %v4018_v13  ;;  %v1643_v39 = vmul.f32 %v2833_v19, %v4023_v57 }
 0x664   : > { %v2835_v2 = vpop.eup %2834 }
 0x665   : > { %v2283_v7 = vadd.f32 %v2265_v21, %v2264_v61  ;;  %v1658_v24 = vmul.f32 %v1642_v10, %v3329_v48  ;;  %v1659_v44 = vmul.f32 %v1643_v39, %v3349_v56  ;;  %v2256_v30 = vmul.f32 %v2835_v2, %v4026_v62 }
 0x666   : > { %v2837_v55 = vpop.eup %2836  ;;  %v2257_v35 = vmul.f32 %v2835_v2, %v4031_v41  ;;  %v293_v41 = vld [vmem:[#allocation7 + $0x30] sm:$0xff] }
 0x667   : > { %2284 = vadd.xlane.f32.xlu0 %v2283_v7  ;;  %v1677_v52 = vadd.f32 %v1659_v44, %v1658_v24  ;;  %v2272_v1 = vmul.f32 %v2256_v30, %v3329_v48  ;;  %v1650_v28 = vmul.f32 %v2837_v55, %v4034_v60  ;;  %v1651_v13 = vmul.f32 %v2837_v55, %v4038_v6 }
 0x668   : > { %v2273_v57 = vmul.f32 %v2257_v35, %v3349_v56  ;;  %2637 = vmatpush3.msra.mxu0 %v293_v41  ;;  %2642 = vmatpush3.msra.mxu1 %v293_v41 }
 0x669   : > { %1678 = vadd.xlane.f32.xlu1 %v1677_v52  ;;  %v1666_v38 = vmul.f32 %v1650_v28, %v3329_v48  ;;  %v1667_v15 = vmul.f32 %v1651_v13, %v3349_v56 }
 0x66a   : > { %v2295_v42 = vadd.f32 %v2273_v57, %v2272_v1 }
 0x66b   : > { %v1689_v62 = vadd.f32 %v1667_v15, %v1666_v38 }
 0x66c   : > { %2296 = vadd.xlane.f32.xlu0 %v2295_v42 }
 0x66d   : > { %1690 = vadd.xlane.f32.xlu1 %v1689_v62 }
 0x6d3   : > { %v2288_v4 = vpop.xlane.xlu0 %2287 }
 0x6d4   : > { %v2325_v17 = vrot.slane %v2288_v4, %v3226_v22 }
 0x6d6   : > { %v1670_v23 = vpop.xlane.xlu1 %1669 }
 0x6d7   : > { %v1707_v47 = vrot.slane %v1670_v23, %v3226_v22 }
 0x6d9   : > { %v1673_v32 = vpop.xlane.xlu0 %1672 }
 0x6da   : > { %v1711_v11 = vrot.slane %v1673_v32, %v3226_v22 }
 0x6db   : > { %v2276_v60 = vpop.xlane.xlu1 %2275 }
 0x6dc   : > { %v2309_v37 = vrot.slane %v2276_v60, %v3226_v22  ;;  %v1736_v16 = vsel %vm956_vm2, %v1711_v11, %v1707_v47 }
 0x6dd   : > { %v2279_v54 = vpop.xlane.xlu0 %2278 }
 0x6de   : > { %v2313_v56 = vrot.slane %v2279_v54, %v3226_v22 }
 0x6df   : > { %v1682_v6 = vpop.xlane.xlu1 %1681 }
 0x6e0   : > { %v2338_v51 = vsel %vm956_vm2, %v2313_v56, %v2309_v37  ;;  %v1723_v9 = vrot.slane %v1682_v6, %v3226_v22  ;;  %vm4253_vm2 = vcmask 64512  }
 0x6e3   : > { %v2282_v49 = vpop.xlane.xlu0 %2281  ;;  %v1676_v50 = vpop.xlane.xlu1 %1675 }
 0x6e4   : > { %v2317_v14 = vrot.slane %v2282_v49, %v3226_v22  ;;  %v1715_v33 = vrot.slane %v1676_v50, %v3226_v22 }
 0x6e6   : > { %v2339_v45 = vsel %vm958_vm3, %v2317_v14, %v2338_v51  ;;  %v1737_v58 = vsel %vm958_vm3, %v1715_v33, %v1736_v16  ;;  %vm4254_vm3 = vmmov %vm4253_vm2 }
 0x6e7   : > { %v2291_v43 = vpop.xlane.xlu0 %2290  ;;  %v1685_v31 = vpop.xlane.xlu1 %1684 }
 0x6e8   : > { %v2329_v53 = vrot.slane %v2291_v43, %v3226_v22  ;;  %v1727_v63 = vrot.slane %v1685_v31, %v3226_v22 }
 0x6eb   : > { %v1688_v46 = vpop.xlane.xlu1 %1687 }
 0x6ec   : > { %v2294_v48 = vpop.xlane.xlu0 %2293  ;;  %v1731_v8 = vrot.slane %v1688_v46, %v3226_v22 }
 0x6ed   : > { %v2333_v25 = vrot.slane %v2294_v48, %v3226_v22 }
 0x6f0   : > { %v2285_v5 = vpop.xlane.xlu0 %2284 }
 0x6f1   : > { %v2321_v18 = vrot.slane %v2285_v5, %v3226_v22 }
 0x6f2   : > { %v1679_v0 = vpop.xlane.xlu1 %1678 }
 0x6f3   : > { %v2340_v12 = vsel %vm960_vm4, %v2321_v18, %v2339_v45  ;;  %v1719_v27 = vrot.slane %v1679_v0, %v3226_v22 }
 0x6f4   : > { %v2341_v26 = vsel %vm962_vm6, %v2325_v17, %v2340_v12 }
 0x6f5   : > { %v1738_v40 = vsel %vm960_vm4, %v1719_v27, %v1737_v58  ;;  %v2297_v59 = vpop.xlane.xlu0 %2296  ;;  %v2342_v36 = vsel %vm964_vm8, %v2329_v53, %v2341_v26 }
 0x6f6   : > { %v1739_v34 = vsel %vm962_vm6, %v1723_v9, %v1738_v40  ;;  %v2337_v3 = vrot.slane %v2297_v59, %v3226_v22  ;;  %v2343_v29 = vsel %vm966_vm9, %v2333_v25, %v2342_v36  ;;  %v1691_v20 = vpop.xlane.xlu1 %1690 }
 0x6f7   : > { %v1740_v19 = vsel %vm964_vm8, %v1727_v63, %v1739_v34  ;;  %v1735_v61 = vrot.slane %v1691_v20, %v3226_v22 }
 0x6f8   : > { %v2344_v21 = vsel %vm968_vm10, %v2337_v3, %v2343_v29  ;;  %v1741_v10 = vsel %vm966_vm9, %v1731_v8, %v1740_v19 }
 0x6f9   : > { %v1742_v39 = vsel %vm968_vm10, %v1735_v61, %v1741_v10  ;;  %2644 = vmatmul.mubr.msk.f32.vlgmr.msra.gmra.mxu1 %vm4253_vm2, %v2344_v21 }
 0x6fa   : > { %2639 = vmatmul.mubr.msk.f32.vlgmr.msra.gmra.mxu0 %vm4254_vm3, %v1742_v39 }
 0x6fb   : > { %2933 = shalt.err (!%p2930_p1)
}
 0x6fc   : > { %s2934_s19 = scalar_lea.hbm %s4145_s5, 1024  ;;  %s2938_s8 = scalar_lea.hbm %s4195_s3, 2048 }
 0x6fd   : > { %p2935_p4 = scmp.ne.s32.totalorder %s4145_s5, %s2934_s19  ;;  %p2939_p8 = scmp.lt.s32.totalorder %s4145_s5, %s4195_s3 }
 0x6fe   : > { %p2940_p11 = scmp.lt.s32.totalorder %s2938_s8, %s2934_s19 }
 0x6ff   : > { %p2936_p6 = pnand %p2935_p4, %p4255_p2 }
 0x700   : > { %p2941_p3 = por %p2940_p11, %p2939_p8 }
 0x701   : > { %p2937_p7 = pneg %p2936_p6 }
 0x703   : > { %p2942_p12 = pnand %p2941_p3, %p2937_p7 }
 0x705   : > { %2945 = shalt.err (!%p2942_p12)
}
 0x706   : > { %s3015_s13 = smov 256   ;;  %s3016_s14 = smov 16   ;;  %v2607_v22 = vld [vmem:[#allocation7 + $0x3a] ss:$0 sm:$0xff]  ;;  %vm4256_vm4 = vmmov %vm4253_vm2 }
 0x707   : > { %2658 = dma.vmem_to_hbm [thread:$0]  (%p4255_p2), %s4139_s11, 1024, %s4145_s5, %s2430_s17, %s3015_s13, %s3015_s13, %s3016_s14   ;;  %vm4257_vm6 = vmmov %vm4253_vm2 }
 0x7b9   : > { %v2413_v2 = vpop.f32.mrf.mxu1 }
 0x7ba   : > { %v1811_v7 = vpop.f32.mrf.mxu0  ;;  %v2414_v24 = vadd.f32 %v2607_v22, %v2413_v2 }
 0x7bb   : > { %v1812_v44 = vadd.f32 %v2607_v22, %v1811_v7  ;;  %v2645_v30 = vpop.f32.mrf.mxu1 }
 0x7bc   : > { %v2417_v55 = vmax.f32 %v2414_v24, 0.0  ;;  %v2640_v35 = vpop.f32.mrf.mxu0 }
 0x7bd   : > { %v1815_v52 = vmax.f32 %v1812_v44, 0.0 }
 0x7be   : > { %2428 = vst.msk [vmem:[%s3449_s24 + $0x10] sm:$0xff] %vm4256_vm4, %v2417_v55 }
 0x7bf   : > { %2427 = vst.msk [vmem:[%s3449_s24 + $0x8] sm:$0xff] %vm4257_vm6, %v1815_v52 }
 0x7c0 PF: > { %s2466_s10 = sand.u32 1, %s2980_s15   ;;  %p4258_p13 = scmp.ne.s32.totalorder %s4207_s22, 0 }
 0x7c1   : > { %p4259_p2 = scmp.ge.s32.totalorder %s2992_s18, 2  ;;  %s2467_s2 = scalar_lea.sflag [#allocation4], %s2466_s10 }
 0x7c3   : > { %p2672_p0 = pnand %p4259_p2, %p4258_p13 }
 0x7c5   : > { %p2673_p5 = pneg %p2672_p0 }
 0x7c7   : > { %2975 = dma.done.wait (%p2673_p5), %s2467_s2, 1024  }
 0x7c8   : > { %2977 = vsyncadd (%p2673_p5), %s2467_s2, 4294966272  ;;  %s4260_s20 = sld [smem:[#allocation13_spill]]  ;;  %p21_p9 = scmp.ge.s32.totalorder %s3096_s27, 4  }
 0x7c9   : > { %s4261_s17 = sld [smem:[#allocation14_spill]]  ;;  %s4262_s15 = smov %s2984_s16 }
 0x7ca   : > { %s4264_s18 = smov %s3096_s27  ;;  %23 = sbr.rel (!%p21_p9) target bundleno = 10 (0xa), region = 106 }
 0x7ce   : > { %s4263_s16 = smov %s4260_s20 }
 0x7cf   :  { %2480 = vsyncpa [#allocation3], 1 }
 0x7d0   :  { %2482 = vsyncpa [#allocation3 + $0x1], 1 }
 0x7d1   :  { %2483 = vsyncpa [#allocation6], 1 }
 0x7d2   :  { %2485 = vsyncpa [#allocation6 + $0x1], 1 }
 0x7d3   :  { %2486 = vsyncpa [#allocation4], 1 }
 0x7d4   :  { %2488 = vsyncpa [#allocation4 + $0x1], 1 }

</bundles_post_ra>
